<compile_context>
chip_gen: v7x
topology: tpu7x:2x2x1
jax: 0.10.0
libtpu: 0.0.40
codegen_flags: <defaults>
</compile_context>

<pallas_src>
import functools

import numpy as np

import jax
import jax.numpy as jnp
from jax import lax
from jax.experimental import pallas as pl
from jax.experimental.pallas import tpu as pltpu

KERNEL_SIZE = 3
ALPHA = 0.85
C1 = 0.01 ** 2
C2 = 0.03 ** 2


def _dssim_l1_kernel(pred_ref, gt_ref, pred_nb_ref, gt_nb_ref, out_ref, *, use_roll):
    # pred_ref / gt_ref       : (C, TH, W) tile of one image
    # pred_nb_ref / gt_nb_ref : (C, 2, W)  rows [above tile, below tile] (reflection-resolved)
    # out_ref                 : (1, TH, W)
    x = pred_ref[...].astype(jnp.float32)
    y = gt_ref[...].astype(jnp.float32)
    xn = pred_nb_ref[...].astype(jnp.float32)
    yn = gt_nb_ref[...].astype(jnp.float32)
    Cc, TH, W = x.shape
    inv_c = 1.0 / Cc

    # L1 term first (small liveness before the SSIM temporaries appear).
    l1 = jnp.sum(jnp.abs(x - y), axis=0, keepdims=True) * inv_c      # (1, TH, W)

    # Boundary masks, built once and reused by all five pooled quantities.
    lane = lax.broadcasted_iota(jnp.int32, (Cc, TH, W), 2)
    is_lft, is_rgt = lane == 0, lane == W - 1
    lane_nb = lax.broadcasted_iota(jnp.int32, (Cc, 2, W), 2)
    is_lft_nb, is_rgt_nb = lane_nb == 0, lane_nb == W - 1
    row = lax.broadcasted_iota(jnp.int32, (Cc, TH, W), 1)
    is_top, is_bot = row == 0, row == TH - 1

    def shift_lane(q, s):
        # element j <- element j - s ; the wrapped/edge column is masked out by the caller.
        if use_roll:
            return pltpu.roll(q, shift=s, axis=2)
        if s == 1:
            return jnp.concatenate([q[:, :, :1], q[:, :, :-1]], axis=2)
        return jnp.concatenate([q[:, :, 1:], q[:, :, -1:]], axis=2)

    def shift_row(q, s):
        if use_roll:
            return pltpu.roll(q, shift=s, axis=1)
        if s == 1:
            return jnp.concatenate([q[:, :1, :], q[:, :-1, :]], axis=1)
        return jnp.concatenate([q[:, 1:, :], q[:, -1:, :]], axis=1)

    def hpool(q, l_mask, r_mask):
        # 1x3 horizontal sum with column reflection (col -1 -> col 1, col W -> col W-2).
        qm = shift_lane(q, 1)    # col j -> q[..., j-1]
        qp = shift_lane(q, -1)   # col j -> q[..., j+1]
        left = jnp.where(l_mask, qp, qm)
        right = jnp.where(r_mask, qm, qp)
        return q + left + right

    def pool3x3(q, q_nb):
        # separable 3x3 average: horizontal pass on tile + halo rows, then vertical pass.
        h = hpool(q, is_lft, is_rgt)                      # (C, TH, W)
        h_nb = hpool(q_nb, is_lft_nb, is_rgt_nb)          # (C, 2, W)
        up = jnp.where(is_top, h_nb[:, 0:1, :], shift_row(h, 1))
        dn = jnp.where(is_bot, h_nb[:, 1:2, :], shift_row(h, -1))
        return (h + up + dn) * (1.0 / (KERNEL_SIZE * KERNEL_SIZE))

    mu_x = pool3x3(x, xn)
    mu_y = pool3x3(y, yn)
    sigma_x = pool3x3(x * x, xn * xn) - mu_x * mu_x
    sigma_y = pool3x3(y * y, yn * yn) - mu_y * mu_y
    sigma_xy = pool3x3(x * y, xn * yn) - mu_x * mu_y

    ssim_n = (2.0 * mu_x * mu_y + C1) * (2.0 * sigma_xy + C2)
    ssim_d = (mu_x * mu_x + mu_y * mu_y + C1) * (sigma_x + sigma_y + C2)
    # exact reciprocal keeps the tight tolerance vs. the reference; approx=True would move
    # it fully onto the EUP fast path at ~2^-12 relative error.
    ssim_pp = jnp.clip((1.0 - ssim_n * pl.reciprocal(ssim_d, approx=False)) * 0.5, 0.0, 1.0)
    ssim = jnp.sum(ssim_pp, axis=0, keepdims=True) * inv_c           # (1, TH, W)

    out_ref[...] = (ALPHA * ssim + (1.0 - ALPHA) * l1).astype(out_ref.dtype)


def _pick_tile_h(H, C, W, budget_bytes=1 << 20):
    """Largest divisor of H whose (C, tile_h, W) f32 block fits the byte budget."""
    target = max(2, budget_bytes // max(1, C * W * 4))
    divisors = [d for d in range(2, H + 1) if H % d == 0]
    if not divisors:
        return H
    fits = [d for d in divisors if d <= target]
    fits8 = [d for d in fits if d % 8 == 0]
    if fits8:
        return max(fits8)
    return max(fits) if fits else min(divisors)


@functools.partial(jax.jit, static_argnames=("tile_h", "use_roll"))
def _dssim_l1_impl(pred, gt, *, tile_h, use_roll):
    N, C, H, W = pred.shape
    nt = H // tile_h

    # Halo rows per tile (reflection at the true image borders: row -1 -> 1, row H -> H-2).
    t = np.arange(nt)
    top_idx = np.where(t == 0, 1, t * tile_h - 1).astype(np.int32)
    bot_idx = np.where(t == nt - 1, H - 2, (t + 1) * tile_h).astype(np.int32)
    nb_idx = np.stack([top_idx, bot_idx], axis=1).reshape(-1)        # (nt*2,)

    def neighbors(a):
        rows = jnp.take(a, nb_idx, axis=2)                 # (N, C, nt*2, W)
        rows = rows.reshape(N, C, nt, 2, W)
        return jnp.transpose(rows, (0, 2, 1, 3, 4))        # (N, nt, C, 2, W)

    pred_nb = neighbors(pred)
    gt_nb = neighbors(gt)

    kernel = functools.partial(_dssim_l1_kernel, use_roll=use_roll)
    return pl.pallas_call(
        kernel,
        out_shape=jax.ShapeDtypeStruct((N, 1, H, W), jnp.float32),
        grid_spec=pl.GridSpec(
            grid=(N, nt),
            in_specs=[
                pl.BlockSpec((None, C, tile_h, W), lambda n, t: (n, 0, t, 0)),
                pl.BlockSpec((None, C, tile_h, W), lambda n, t: (n, 0, t, 0)),
                pl.BlockSpec((None, None, C, 2, W), lambda n, t: (n, t, 0, 0, 0)),
                pl.BlockSpec((None, None, C, 2, W), lambda n, t: (n, t, 0, 0, 0)),
            ],
            out_specs=pl.BlockSpec((None, 1, tile_h, W), lambda n, t: (n, 0, t, 0)),
        ),
        compiler_params=pltpu.CompilerParams(
            dimension_semantics=("parallel", "parallel"),
            vmem_limit_bytes=48 * 1024 * 1024,
        ),
    )(pred, gt, pred_nb, gt_nb)


def dssim_l1(pred, gt, tile_h=None):
    """pred, gt: (N, C, H, W) float32  ->  (N, 1, H, W) float32 per-pixel DSSIM+L1 loss."""
    N, C, H, W = pred.shape
    assert H >= 2 and W >= 2, "reflection pad of 1 needs H, W >= 2"
    if tile_h is None:
        tile_h = _pick_tile_h(H, C, W)
    assert 1 <= tile_h <= H and H % tile_h == 0, "tile_h must divide H"
    try:
        out = _dssim_l1_impl(pred, gt, tile_h=tile_h, use_roll=True)
        return jax.block_until_ready(out)
    except Exception:
        # TODO(synk): drop this fallback once pltpu.roll lowering is confirmed for all
        # target shapes; the slice-based shifts are slower (relayout copies) but correct.
        return _dssim_l1_impl(pred, gt, tile_h=tile_h, use_roll=False)


def _reference(pred, gt):
    """Pure-JAX reference mirroring the PyTorch per-pixel branch."""
    def refl(a):
        return jnp.pad(a, ((0, 0), (0, 0), (1, 1), (1, 1)), mode="reflect")

    def pool(a):
        out = jnp.zeros_like(a[:, :, 1:-1, 1:-1])
        H = out.shape[2]
        W = out.shape[3]
        for di in range(3):
            for dj in range(3):
                out = out + a[:, :, di:di + H, dj:dj + W]
        return out / 9.0

    x, y = refl(pred), refl(gt)
    mu_x, mu_y = pool(x), pool(y)
    sig_x = pool(x * x) - mu_x ** 2
    sig_y = pool(y * y) - mu_y ** 2
    sig_xy = pool(x * y) - mu_x * mu_y
    n = (2 * mu_x * mu_y + C1) * (2 * sig_xy + C2)
    d = (mu_x ** 2 + mu_y ** 2 + C1) * (sig_x + sig_y + C2)
    ssim = jnp.clip((1 - n / d) / 2, 0.0, 1.0).mean(axis=1, keepdims=True)
    l1 = jnp.abs(pred - gt).mean(axis=1, keepdims=True)
    return ALPHA * ssim + (1 - ALPHA) * l1


if __name__ == "__main__":
    key = jax.random.PRNGKey(0)
    k1, k2 = jax.random.split(key)
    # RGB-like NCHW images; W=128 keeps the lane axis dense (multiple of 128).
    N, Cc, H, W = 2, 3, 16, 128
    pred = jax.random.uniform(k1, (N, Cc, H, W), dtype=jnp.float32)
    gt = jax.random.uniform(k2, (N, Cc, H, W), dtype=jnp.float32)

    ref = _reference(pred, gt)

    # Multi-tile path (2 H-tiles of 8 rows): exercises the halo/reflection handling.
    out = jax.block_until_ready(dssim_l1(pred, gt, tile_h=8))
    assert out.shape == (N, 1, H, W)
    assert float(jnp.max(jnp.abs(out - ref))) < 5e-5

    # Single-tile (full-height) path.
    out2 = jax.block_until_ready(dssim_l1(pred, gt, tile_h=16))
    assert float(jnp.max(jnp.abs(out2 - ref))) < 5e-5

    print("KERNEL_OK")
</pallas_src>

<mosaic_0001>
module attributes {stable_mosaic.version = 11 : i64} {
  func.func @_dssim_l1_kernel(%arg0: i32, %arg1: i32, %arg2: memref<1x3x8x128xf32, #tpu.memory_space<vmem>>, %arg3: memref<1x3x8x128xf32, #tpu.memory_space<vmem>>, %arg4: memref<1x1x3x2x128xf32, #tpu.memory_space<vmem>>, %arg5: memref<1x1x3x2x128xf32, #tpu.memory_space<vmem>>, %arg6: memref<1x1x8x128xf32, #tpu.memory_space<vmem>>) attributes {dimension_semantics = [#tpu.dimension_semantics<parallel>, #tpu.dimension_semantics<parallel>], iteration_bounds = array<i64: 2, 2>, scalar_prefetch = 0 : i64, scratch_operands = 0 : i64, tpu.core_type = #tpu.core_type<tc>, window_params = [{transform_indices = @transform_0, window_bounds = array<i64: 1, 3, 8, 128>}, {transform_indices = @transform_1, window_bounds = array<i64: 1, 3, 8, 128>}, {transform_indices = @transform_2, window_bounds = array<i64: 1, 1, 3, 2, 128>}, {transform_indices = @transform_3, window_bounds = array<i64: 1, 1, 3, 2, 128>}, {transform_indices = @transform_4, window_bounds = array<i64: 1, 1, 8, 128>}]} {
    %c0 = arith.constant 0 : index
    %c0_0 = arith.constant 0 : index
    %c0_1 = arith.constant 0 : index
    %c0_2 = arith.constant 0 : index
    %0 = vector.load %arg2[%c0, %c0_0, %c0_1, %c0_2] : memref<1x3x8x128xf32, #tpu.memory_space<vmem>>, vector<1x3x8x128xf32>
    %1 = vector.shape_cast %0 : vector<1x3x8x128xf32> to vector<3x8x128xf32>
    %c0_3 = arith.constant 0 : index
    %c0_4 = arith.constant 0 : index
    %c0_5 = arith.constant 0 : index
    %c0_6 = arith.constant 0 : index
    %2 = vector.load %arg3[%c0_3, %c0_4, %c0_5, %c0_6] : memref<1x3x8x128xf32, #tpu.memory_space<vmem>>, vector<1x3x8x128xf32>
    %3 = vector.shape_cast %2 : vector<1x3x8x128xf32> to vector<3x8x128xf32>
    %c0_7 = arith.constant 0 : index
    %c0_8 = arith.constant 0 : index
    %c0_9 = arith.constant 0 : index
    %c0_10 = arith.constant 0 : index
    %c0_11 = arith.constant 0 : index
    %4 = vector.load %arg4[%c0_7, %c0_8, %c0_9, %c0_10, %c0_11] : memref<1x1x3x2x128xf32, #tpu.memory_space<vmem>>, vector<1x1x3x2x128xf32>
    %5 = vector.shape_cast %4 : vector<1x1x3x2x128xf32> to vector<3x2x128xf32>
    %c0_12 = arith.constant 0 : index
    %c0_13 = arith.constant 0 : index
    %c0_14 = arith.constant 0 : index
    %c0_15 = arith.constant 0 : index
    %c0_16 = arith.constant 0 : index
    %6 = vector.load %arg5[%c0_12, %c0_13, %c0_14, %c0_15, %c0_16] : memref<1x1x3x2x128xf32, #tpu.memory_space<vmem>>, vector<1x1x3x2x128xf32>
    %7 = vector.shape_cast %6 : vector<1x1x3x2x128xf32> to vector<3x2x128xf32>
    %8 = arith.subf %1, %3 : vector<3x8x128xf32>
    %9 = math.absf %8 : vector<3x8x128xf32>
    %cst = arith.constant dense<0.000000e+00> : vector<8x128xf32>
    %10 = vector.multi_reduction <add>, %9, %cst [0] : vector<3x8x128xf32> to vector<8x128xf32>
    %11 = vector.shape_cast %10 : vector<8x128xf32> to vector<1x8x128xf32>
    %cst_17 = arith.constant 0.333333343 : f32
    %12 = vector.broadcast %cst_17 : f32 to vector<1x8x128xf32>
    %13 = arith.mulf %11, %12 : vector<1x8x128xf32>
    %14 = tpu.iota {dimensions = array<i32: 2>} : vector<3x8x128xi32>
    %c0_i32 = arith.constant 0 : i32
    %15 = vector.broadcast %c0_i32 : i32 to vector<3x8x128xi32>
    %16 = arith.cmpi eq, %14, %15 : vector<3x8x128xi32>
    %c127_i32 = arith.constant 127 : i32
    %17 = vector.broadcast %c127_i32 : i32 to vector<3x8x128xi32>
    %18 = arith.cmpi eq, %14, %17 : vector<3x8x128xi32>
    %19 = tpu.iota {dimensions = array<i32: 2>} : vector<3x2x128xi32>
    %c0_i32_18 = arith.constant 0 : i32
    %20 = vector.broadcast %c0_i32_18 : i32 to vector<3x2x128xi32>
    %21 = arith.cmpi eq, %19, %20 : vector<3x2x128xi32>
    %c127_i32_19 = arith.constant 127 : i32
    %22 = vector.broadcast %c127_i32_19 : i32 to vector<3x2x128xi32>
    %23 = arith.cmpi eq, %19, %22 : vector<3x2x128xi32>
    %24 = tpu.iota {dimensions = array<i32: 1>} : vector<3x8x128xi32>
    %c0_i32_20 = arith.constant 0 : i32
    %25 = vector.broadcast %c0_i32_20 : i32 to vector<3x8x128xi32>
    %26 = arith.cmpi eq, %24, %25 : vector<3x8x128xi32>
    %c7_i32 = arith.constant 7 : i32
    %27 = vector.broadcast %c7_i32 : i32 to vector<3x8x128xi32>
    %28 = arith.cmpi eq, %24, %27 : vector<3x8x128xi32>
    %29 = vector.extract_strided_slice %1 {offsets = [0, 0, 0], sizes = [3, 8, 1], strides = [1, 1, 1]} : vector<3x8x128xf32> to vector<3x8x1xf32>
    %30 = vector.extract_strided_slice %1 {offsets = [0, 0, 0], sizes = [3, 8, 127], strides = [1, 1, 1]} : vector<3x8x128xf32> to vector<3x8x127xf32>
    %31 = tpu.concatenate %29, %30 in 2 : vector<3x8x1xf32>, vector<3x8x127xf32> -> vector<3x8x128xf32>
    %32 = vector.extract_strided_slice %1 {offsets = [0, 0, 1], sizes = [3, 8, 127], strides = [1, 1, 1]} : vector<3x8x128xf32> to vector<3x8x127xf32>
    %33 = vector.extract_strided_slice %1 {offsets = [0, 0, 127], sizes = [3, 8, 1], strides = [1, 1, 1]} : vector<3x8x128xf32> to vector<3x8x1xf32>
    %34 = tpu.concatenate %32, %33 in 2 : vector<3x8x127xf32>, vector<3x8x1xf32> -> vector<3x8x128xf32>
    %35 = arith.select %16, %34, %31 : vector<3x8x128xi1>, vector<3x8x128xf32>
    %36 = arith.select %18, %31, %34 : vector<3x8x128xi1>, vector<3x8x128xf32>
    %37 = arith.addf %1, %35 : vector<3x8x128xf32>
    %38 = arith.addf %37, %36 : vector<3x8x128xf32>
    %39 = vector.extract_strided_slice %5 {offsets = [0, 0, 0], sizes = [3, 2, 1], strides = [1, 1, 1]} : vector<3x2x128xf32> to vector<3x2x1xf32>
    %40 = vector.extract_strided_slice %5 {offsets = [0, 0, 0], sizes = [3, 2, 127], strides = [1, 1, 1]} : vector<3x2x128xf32> to vector<3x2x127xf32>
    %41 = tpu.concatenate %39, %40 in 2 : vector<3x2x1xf32>, vector<3x2x127xf32> -> vector<3x2x128xf32>
    %42 = vector.extract_strided_slice %5 {offsets = [0, 0, 1], sizes = [3, 2, 127], strides = [1, 1, 1]} : vector<3x2x128xf32> to vector<3x2x127xf32>
    %43 = vector.extract_strided_slice %5 {offsets = [0, 0, 127], sizes = [3, 2, 1], strides = [1, 1, 1]} : vector<3x2x128xf32> to vector<3x2x1xf32>
    %44 = tpu.concatenate %42, %43 in 2 : vector<3x2x127xf32>, vector<3x2x1xf32> -> vector<3x2x128xf32>
    %45 = arith.select %21, %44, %41 : vector<3x2x128xi1>, vector<3x2x128xf32>
    %46 = arith.select %23, %41, %44 : vector<3x2x128xi1>, vector<3x2x128xf32>
    %47 = arith.addf %5, %45 : vector<3x2x128xf32>
    %48 = arith.addf %47, %46 : vector<3x2x128xf32>
    %49 = vector.extract_strided_slice %48 {offsets = [0, 0, 0], sizes = [3, 1, 128], strides = [1, 1, 1]} : vector<3x2x128xf32> to vector<3x1x128xf32>
    %50 = vector.extract_strided_slice %38 {offsets = [0, 0, 0], sizes = [3, 1, 128], strides = [1, 1, 1]} : vector<3x8x128xf32> to vector<3x1x128xf32>
    %51 = vector.extract_strided_slice %38 {offsets = [0, 0, 0], sizes = [3, 7, 128], strides = [1, 1, 1]} : vector<3x8x128xf32> to vector<3x7x128xf32>
    %52 = tpu.concatenate %50, %51 in 1 : vector<3x1x128xf32>, vector<3x7x128xf32> -> vector<3x8x128xf32>
    %53 = vector.shape_cast %49 : vector<3x1x128xf32> to vector<3x1x128xf32>
    %54 = vector.broadcast %53 : vector<3x1x128xf32> to vector<3x8x128xf32>
    %55 = arith.select %26, %54, %52 : vector<3x8x128xi1>, vector<3x8x128xf32>
    %56 = vector.extract_strided_slice %48 {offsets = [0, 1, 0], sizes = [3, 1, 128], strides = [1, 1, 1]} : vector<3x2x128xf32> to vector<3x1x128xf32>
    %57 = vector.extract_strided_slice %38 {offsets = [0, 1, 0], sizes = [3, 7, 128], strides = [1, 1, 1]} : vector<3x8x128xf32> to vector<3x7x128xf32>
    %58 = vector.extract_strided_slice %38 {offsets = [0, 7, 0], sizes = [3, 1, 128], strides = [1, 1, 1]} : vector<3x8x128xf32> to vector<3x1x128xf32>
    %59 = tpu.concatenate %57, %58 in 1 : vector<3x7x128xf32>, vector<3x1x128xf32> -> vector<3x8x128xf32>
    %60 = vector.shape_cast %56 : vector<3x1x128xf32> to vector<3x1x128xf32>
    %61 = vector.broadcast %60 : vector<3x1x128xf32> to vector<3x8x128xf32>
    %62 = arith.select %28, %61, %59 : vector<3x8x128xi1>, vector<3x8x128xf32>
    %63 = arith.addf %38, %55 : vector<3x8x128xf32>
    %64 = arith.addf %63, %62 : vector<3x8x128xf32>
    %cst_21 = arith.constant 0.111111112 : f32
    %65 = vector.broadcast %cst_21 : f32 to vector<3x8x128xf32>
    %66 = arith.mulf %64, %65 : vector<3x8x128xf32>
    %67 = vector.extract_strided_slice %3 {offsets = [0, 0, 0], sizes = [3, 8, 1], strides = [1, 1, 1]} : vector<3x8x128xf32> to vector<3x8x1xf32>
    %68 = vector.extract_strided_slice %3 {offsets = [0, 0, 0], sizes = [3, 8, 127], strides = [1, 1, 1]} : vector<3x8x128xf32> to vector<3x8x127xf32>
    %69 = tpu.concatenate %67, %68 in 2 : vector<3x8x1xf32>, vector<3x8x127xf32> -> vector<3x8x128xf32>
    %70 = vector.extract_strided_slice %3 {offsets = [0, 0, 1], sizes = [3, 8, 127], strides = [1, 1, 1]} : vector<3x8x128xf32> to vector<3x8x127xf32>
    %71 = vector.extract_strided_slice %3 {offsets = [0, 0, 127], sizes = [3, 8, 1], strides = [1, 1, 1]} : vector<3x8x128xf32> to vector<3x8x1xf32>
    %72 = tpu.concatenate %70, %71 in 2 : vector<3x8x127xf32>, vector<3x8x1xf32> -> vector<3x8x128xf32>
    %73 = arith.select %16, %72, %69 : vector<3x8x128xi1>, vector<3x8x128xf32>
    %74 = arith.select %18, %69, %72 : vector<3x8x128xi1>, vector<3x8x128xf32>
    %75 = arith.addf %3, %73 : vector<3x8x128xf32>
    %76 = arith.addf %75, %74 : vector<3x8x128xf32>
    %77 = vector.extract_strided_slice %7 {offsets = [0, 0, 0], sizes = [3, 2, 1], strides = [1, 1, 1]} : vector<3x2x128xf32> to vector<3x2x1xf32>
    %78 = vector.extract_strided_slice %7 {offsets = [0, 0, 0], sizes = [3, 2, 127], strides = [1, 1, 1]} : vector<3x2x128xf32> to vector<3x2x127xf32>
    %79 = tpu.concatenate %77, %78 in 2 : vector<3x2x1xf32>, vector<3x2x127xf32> -> vector<3x2x128xf32>
    %80 = vector.extract_strided_slice %7 {offsets = [0, 0, 1], sizes = [3, 2, 127], strides = [1, 1, 1]} : vector<3x2x128xf32> to vector<3x2x127xf32>
    %81 = vector.extract_strided_slice %7 {offsets = [0, 0, 127], sizes = [3, 2, 1], strides = [1, 1, 1]} : vector<3x2x128xf32> to vector<3x2x1xf32>
    %82 = tpu.concatenate %80, %81 in 2 : vector<3x2x127xf32>, vector<3x2x1xf32> -> vector<3x2x128xf32>
    %83 = arith.select %21, %82, %79 : vector<3x2x128xi1>, vector<3x2x128xf32>
    %84 = arith.select %23, %79, %82 : vector<3x2x128xi1>, vector<3x2x128xf32>
    %85 = arith.addf %7, %83 : vector<3x2x128xf32>
    %86 = arith.addf %85, %84 : vector<3x2x128xf32>
    %87 = vector.extract_strided_slice %86 {offsets = [0, 0, 0], sizes = [3, 1, 128], strides = [1, 1, 1]} : vector<3x2x128xf32> to vector<3x1x128xf32>
    %88 = vector.extract_strided_slice %76 {offsets = [0, 0, 0], sizes = [3, 1, 128], strides = [1, 1, 1]} : vector<3x8x128xf32> to vector<3x1x128xf32>
    %89 = vector.extract_strided_slice %76 {offsets = [0, 0, 0], sizes = [3, 7, 128], strides = [1, 1, 1]} : vector<3x8x128xf32> to vector<3x7x128xf32>
    %90 = tpu.concatenate %88, %89 in 1 : vector<3x1x128xf32>, vector<3x7x128xf32> -> vector<3x8x128xf32>
    %91 = vector.shape_cast %87 : vector<3x1x128xf32> to vector<3x1x128xf32>
    %92 = vector.broadcast %91 : vector<3x1x128xf32> to vector<3x8x128xf32>
    %93 = arith.select %26, %92, %90 : vector<3x8x128xi1>, vector<3x8x128xf32>
    %94 = vector.extract_strided_slice %86 {offsets = [0, 1, 0], sizes = [3, 1, 128], strides = [1, 1, 1]} : vector<3x2x128xf32> to vector<3x1x128xf32>
    %95 = vector.extract_strided_slice %76 {offsets = [0, 1, 0], sizes = [3, 7, 128], strides = [1, 1, 1]} : vector<3x8x128xf32> to vector<3x7x128xf32>
    %96 = vector.extract_strided_slice %76 {offsets = [0, 7, 0], sizes = [3, 1, 128], strides = [1, 1, 1]} : vector<3x8x128xf32> to vector<3x1x128xf32>
    %97 = tpu.concatenate %95, %96 in 1 : vector<3x7x128xf32>, vector<3x1x128xf32> -> vector<3x8x128xf32>
    %98 = vector.shape_cast %94 : vector<3x1x128xf32> to vector<3x1x128xf32>
    %99 = vector.broadcast %98 : vector<3x1x128xf32> to vector<3x8x128xf32>
    %100 = arith.select %28, %99, %97 : vector<3x8x128xi1>, vector<3x8x128xf32>
    %101 = arith.addf %76, %93 : vector<3x8x128xf32>
    %102 = arith.addf %101, %100 : vector<3x8x128xf32>
    %cst_22 = arith.constant 0.111111112 : f32
    %103 = vector.broadcast %cst_22 : f32 to vector<3x8x128xf32>
    %104 = arith.mulf %102, %103 : vector<3x8x128xf32>
    %105 = arith.mulf %1, %1 : vector<3x8x128xf32>
    %106 = arith.mulf %5, %5 : vector<3x2x128xf32>
    %107 = vector.extract_strided_slice %105 {offsets = [0, 0, 0], sizes = [3, 8, 1], strides = [1, 1, 1]} : vector<3x8x128xf32> to vector<3x8x1xf32>
    %108 = vector.extract_strided_slice %105 {offsets = [0, 0, 0], sizes = [3, 8, 127], strides = [1, 1, 1]} : vector<3x8x128xf32> to vector<3x8x127xf32>
    %109 = tpu.concatenate %107, %108 in 2 : vector<3x8x1xf32>, vector<3x8x127xf32> -> vector<3x8x128xf32>
    %110 = vector.extract_strided_slice %105 {offsets = [0, 0, 1], sizes = [3, 8, 127], strides = [1, 1, 1]} : vector<3x8x128xf32> to vector<3x8x127xf32>
    %111 = vector.extract_strided_slice %105 {offsets = [0, 0, 127], sizes = [3, 8, 1], strides = [1, 1, 1]} : vector<3x8x128xf32> to vector<3x8x1xf32>
    %112 = tpu.concatenate %110, %111 in 2 : vector<3x8x127xf32>, vector<3x8x1xf32> -> vector<3x8x128xf32>
    %113 = arith.select %16, %112, %109 : vector<3x8x128xi1>, vector<3x8x128xf32>
    %114 = arith.select %18, %109, %112 : vector<3x8x128xi1>, vector<3x8x128xf32>
    %115 = arith.addf %105, %113 : vector<3x8x128xf32>
    %116 = arith.addf %115, %114 : vector<3x8x128xf32>
    %117 = vector.extract_strided_slice %106 {offsets = [0, 0, 0], sizes = [3, 2, 1], strides = [1, 1, 1]} : vector<3x2x128xf32> to vector<3x2x1xf32>
    %118 = vector.extract_strided_slice %106 {offsets = [0, 0, 0], sizes = [3, 2, 127], strides = [1, 1, 1]} : vector<3x2x128xf32> to vector<3x2x127xf32>
    %119 = tpu.concatenate %117, %118 in 2 : vector<3x2x1xf32>, vector<3x2x127xf32> -> vector<3x2x128xf32>
    %120 = vector.extract_strided_slice %106 {offsets = [0, 0, 1], sizes = [3, 2, 127], strides = [1, 1, 1]} : vector<3x2x128xf32> to vector<3x2x127xf32>
    %121 = vector.extract_strided_slice %106 {offsets = [0, 0, 127], sizes = [3, 2, 1], strides = [1, 1, 1]} : vector<3x2x128xf32> to vector<3x2x1xf32>
    %122 = tpu.concatenate %120, %121 in 2 : vector<3x2x127xf32>, vector<3x2x1xf32> -> vector<3x2x128xf32>
    %123 = arith.select %21, %122, %119 : vector<3x2x128xi1>, vector<3x2x128xf32>
    %124 = arith.select %23, %119, %122 : vector<3x2x128xi1>, vector<3x2x128xf32>
    %125 = arith.addf %106, %123 : vector<3x2x128xf32>
    %126 = arith.addf %125, %124 : vector<3x2x128xf32>
    %127 = vector.extract_strided_slice %126 {offsets = [0, 0, 0], sizes = [3, 1, 128], strides = [1, 1, 1]} : vector<3x2x128xf32> to vector<3x1x128xf32>
    %128 = vector.extract_strided_slice %116 {offsets = [0, 0, 0], sizes = [3, 1, 128], strides = [1, 1, 1]} : vector<3x8x128xf32> to vector<3x1x128xf32>
    %129 = vector.extract_strided_slice %116 {offsets = [0, 0, 0], sizes = [3, 7, 128], strides = [1, 1, 1]} : vector<3x8x128xf32> to vector<3x7x128xf32>
    %130 = tpu.concatenate %128, %129 in 1 : vector<3x1x128xf32>, vector<3x7x128xf32> -> vector<3x8x128xf32>
    %131 = vector.shape_cast %127 : vector<3x1x128xf32> to vector<3x1x128xf32>
    %132 = vector.broadcast %131 : vector<3x1x128xf32> to vector<3x8x128xf32>
    %133 = arith.select %26, %132, %130 : vector<3x8x128xi1>, vector<3x8x128xf32>
    %134 = vector.extract_strided_slice %126 {offsets = [0, 1, 0], sizes = [3, 1, 128], strides = [1, 1, 1]} : vector<3x2x128xf32> to vector<3x1x128xf32>
    %135 = vector.extract_strided_slice %116 {offsets = [0, 1, 0], sizes = [3, 7, 128], strides = [1, 1, 1]} : vector<3x8x128xf32> to vector<3x7x128xf32>
    %136 = vector.extract_strided_slice %116 {offsets = [0, 7, 0], sizes = [3, 1, 128], strides = [1, 1, 1]} : vector<3x8x128xf32> to vector<3x1x128xf32>
    %137 = tpu.concatenate %135, %136 in 1 : vector<3x7x128xf32>, vector<3x1x128xf32> -> vector<3x8x128xf32>
    %138 = vector.shape_cast %134 : vector<3x1x128xf32> to vector<3x1x128xf32>
    %139 = vector.broadcast %138 : vector<3x1x128xf32> to vector<3x8x128xf32>
    %140 = arith.select %28, %139, %137 : vector<3x8x128xi1>, vector<3x8x128xf32>
    %141 = arith.addf %116, %133 : vector<3x8x128xf32>
    %142 = arith.addf %141, %140 : vector<3x8x128xf32>
    %cst_23 = arith.constant 0.111111112 : f32
    %143 = vector.broadcast %cst_23 : f32 to vector<3x8x128xf32>
    %144 = arith.mulf %142, %143 : vector<3x8x128xf32>
    %145 = arith.mulf %66, %66 : vector<3x8x128xf32>
    %146 = arith.subf %144, %145 : vector<3x8x128xf32>
    %147 = arith.mulf %3, %3 : vector<3x8x128xf32>
    %148 = arith.mulf %7, %7 : vector<3x2x128xf32>
    %149 = vector.extract_strided_slice %147 {offsets = [0, 0, 0], sizes = [3, 8, 1], strides = [1, 1, 1]} : vector<3x8x128xf32> to vector<3x8x1xf32>
    %150 = vector.extract_strided_slice %147 {offsets = [0, 0, 0], sizes = [3, 8, 127], strides = [1, 1, 1]} : vector<3x8x128xf32> to vector<3x8x127xf32>
    %151 = tpu.concatenate %149, %150 in 2 : vector<3x8x1xf32>, vector<3x8x127xf32> -> vector<3x8x128xf32>
    %152 = vector.extract_strided_slice %147 {offsets = [0, 0, 1], sizes = [3, 8, 127], strides = [1, 1, 1]} : vector<3x8x128xf32> to vector<3x8x127xf32>
    %153 = vector.extract_strided_slice %147 {offsets = [0, 0, 127], sizes = [3, 8, 1], strides = [1, 1, 1]} : vector<3x8x128xf32> to vector<3x8x1xf32>
    %154 = tpu.concatenate %152, %153 in 2 : vector<3x8x127xf32>, vector<3x8x1xf32> -> vector<3x8x128xf32>
    %155 = arith.select %16, %154, %151 : vector<3x8x128xi1>, vector<3x8x128xf32>
    %156 = arith.select %18, %151, %154 : vector<3x8x128xi1>, vector<3x8x128xf32>
    %157 = arith.addf %147, %155 : vector<3x8x128xf32>
    %158 = arith.addf %157, %156 : vector<3x8x128xf32>
    %159 = vector.extract_strided_slice %148 {offsets = [0, 0, 0], sizes = [3, 2, 1], strides = [1, 1, 1]} : vector<3x2x128xf32> to vector<3x2x1xf32>
    %160 = vector.extract_strided_slice %148 {offsets = [0, 0, 0], sizes = [3, 2, 127], strides = [1, 1, 1]} : vector<3x2x128xf32> to vector<3x2x127xf32>
    %161 = tpu.concatenate %159, %160 in 2 : vector<3x2x1xf32>, vector<3x2x127xf32> -> vector<3x2x128xf32>
    %162 = vector.extract_strided_slice %148 {offsets = [0, 0, 1], sizes = [3, 2, 127], strides = [1, 1, 1]} : vector<3x2x128xf32> to vector<3x2x127xf32>
    %163 = vector.extract_strided_slice %148 {offsets = [0, 0, 127], sizes = [3, 2, 1], strides = [1, 1, 1]} : vector<3x2x128xf32> to vector<3x2x1xf32>
    %164 = tpu.concatenate %162, %163 in 2 : vector<3x2x127xf32>, vector<3x2x1xf32> -> vector<3x2x128xf32>
    %165 = arith.select %21, %164, %161 : vector<3x2x128xi1>, vector<3x2x128xf32>
    %166 = arith.select %23, %161, %164 : vector<3x2x128xi1>, vector<3x2x128xf32>
    %167 = arith.addf %148, %165 : vector<3x2x128xf32>
    %168 = arith.addf %167, %166 : vector<3x2x128xf32>
    %169 = vector.extract_strided_slice %168 {offsets = [0, 0, 0], sizes = [3, 1, 128], strides = [1, 1, 1]} : vector<3x2x128xf32> to vector<3x1x128xf32>
    %170 = vector.extract_strided_slice %158 {offsets = [0, 0, 0], sizes = [3, 1, 128], strides = [1, 1, 1]} : vector<3x8x128xf32> to vector<3x1x128xf32>
    %171 = vector.extract_strided_slice %158 {offsets = [0, 0, 0], sizes = [3, 7, 128], strides = [1, 1, 1]} : vector<3x8x128xf32> to vector<3x7x128xf32>
    %172 = tpu.concatenate %170, %171 in 1 : vector<3x1x128xf32>, vector<3x7x128xf32> -> vector<3x8x128xf32>
    %173 = vector.shape_cast %169 : vector<3x1x128xf32> to vector<3x1x128xf32>
    %174 = vector.broadcast %173 : vector<3x1x128xf32> to vector<3x8x128xf32>
    %175 = arith.select %26, %174, %172 : vector<3x8x128xi1>, vector<3x8x128xf32>
    %176 = vector.extract_strided_slice %168 {offsets = [0, 1, 0], sizes = [3, 1, 128], strides = [1, 1, 1]} : vector<3x2x128xf32> to vector<3x1x128xf32>
    %177 = vector.extract_strided_slice %158 {offsets = [0, 1, 0], sizes = [3, 7, 128], strides = [1, 1, 1]} : vector<3x8x128xf32> to vector<3x7x128xf32>
    %178 = vector.extract_strided_slice %158 {offsets = [0, 7, 0], sizes = [3, 1, 128], strides = [1, 1, 1]} : vector<3x8x128xf32> to vector<3x1x128xf32>
    %179 = tpu.concatenate %177, %178 in 1 : vector<3x7x128xf32>, vector<3x1x128xf32> -> vector<3x8x128xf32>
    %180 = vector.shape_cast %176 : vector<3x1x128xf32> to vector<3x1x128xf32>
    %181 = vector.broadcast %180 : vector<3x1x128xf32> to vector<3x8x128xf32>
    %182 = arith.select %28, %181, %179 : vector<3x8x128xi1>, vector<3x8x128xf32>
    %183 = arith.addf %158, %175 : vector<3x8x128xf32>
    %184 = arith.addf %183, %182 : vector<3x8x128xf32>
    %cst_24 = arith.constant 0.111111112 : f32
    %185 = vector.broadcast %cst_24 : f32 to vector<3x8x128xf32>
    %186 = arith.mulf %184, %185 : vector<3x8x128xf32>
    %187 = arith.mulf %104, %104 : vector<3x8x128xf32>
    %188 = arith.subf %186, %187 : vector<3x8x128xf32>
    %189 = arith.mulf %1, %3 : vector<3x8x128xf32>
    %190 = arith.mulf %5, %7 : vector<3x2x128xf32>
    %191 = vector.extract_strided_slice %189 {offsets = [0, 0, 0], sizes = [3, 8, 1], strides = [1, 1, 1]} : vector<3x8x128xf32> to vector<3x8x1xf32>
    %192 = vector.extract_strided_slice %189 {offsets = [0, 0, 0], sizes = [3, 8, 127], strides = [1, 1, 1]} : vector<3x8x128xf32> to vector<3x8x127xf32>
    %193 = tpu.concatenate %191, %192 in 2 : vector<3x8x1xf32>, vector<3x8x127xf32> -> vector<3x8x128xf32>
    %194 = vector.extract_strided_slice %189 {offsets = [0, 0, 1], sizes = [3, 8, 127], strides = [1, 1, 1]} : vector<3x8x128xf32> to vector<3x8x127xf32>
    %195 = vector.extract_strided_slice %189 {offsets = [0, 0, 127], sizes = [3, 8, 1], strides = [1, 1, 1]} : vector<3x8x128xf32> to vector<3x8x1xf32>
    %196 = tpu.concatenate %194, %195 in 2 : vector<3x8x127xf32>, vector<3x8x1xf32> -> vector<3x8x128xf32>
    %197 = arith.select %16, %196, %193 : vector<3x8x128xi1>, vector<3x8x128xf32>
    %198 = arith.select %18, %193, %196 : vector<3x8x128xi1>, vector<3x8x128xf32>
    %199 = arith.addf %189, %197 : vector<3x8x128xf32>
    %200 = arith.addf %199, %198 : vector<3x8x128xf32>
    %201 = vector.extract_strided_slice %190 {offsets = [0, 0, 0], sizes = [3, 2, 1], strides = [1, 1, 1]} : vector<3x2x128xf32> to vector<3x2x1xf32>
    %202 = vector.extract_strided_slice %190 {offsets = [0, 0, 0], sizes = [3, 2, 127], strides = [1, 1, 1]} : vector<3x2x128xf32> to vector<3x2x127xf32>
    %203 = tpu.concatenate %201, %202 in 2 : vector<3x2x1xf32>, vector<3x2x127xf32> -> vector<3x2x128xf32>
    %204 = vector.extract_strided_slice %190 {offsets = [0, 0, 1], sizes = [3, 2, 127], strides = [1, 1, 1]} : vector<3x2x128xf32> to vector<3x2x127xf32>
    %205 = vector.extract_strided_slice %190 {offsets = [0, 0, 127], sizes = [3, 2, 1], strides = [1, 1, 1]} : vector<3x2x128xf32> to vector<3x2x1xf32>
    %206 = tpu.concatenate %204, %205 in 2 : vector<3x2x127xf32>, vector<3x2x1xf32> -> vector<3x2x128xf32>
    %207 = arith.select %21, %206, %203 : vector<3x2x128xi1>, vector<3x2x128xf32>
    %208 = arith.select %23, %203, %206 : vector<3x2x128xi1>, vector<3x2x128xf32>
    %209 = arith.addf %190, %207 : vector<3x2x128xf32>
    %210 = arith.addf %209, %208 : vector<3x2x128xf32>
    %211 = vector.extract_strided_slice %210 {offsets = [0, 0, 0], sizes = [3, 1, 128], strides = [1, 1, 1]} : vector<3x2x128xf32> to vector<3x1x128xf32>
    %212 = vector.extract_strided_slice %200 {offsets = [0, 0, 0], sizes = [3, 1, 128], strides = [1, 1, 1]} : vector<3x8x128xf32> to vector<3x1x128xf32>
    %213 = vector.extract_strided_slice %200 {offsets = [0, 0, 0], sizes = [3, 7, 128], strides = [1, 1, 1]} : vector<3x8x128xf32> to vector<3x7x128xf32>
    %214 = tpu.concatenate %212, %213 in 1 : vector<3x1x128xf32>, vector<3x7x128xf32> -> vector<3x8x128xf32>
    %215 = vector.shape_cast %211 : vector<3x1x128xf32> to vector<3x1x128xf32>
    %216 = vector.broadcast %215 : vector<3x1x128xf32> to vector<3x8x128xf32>
    %217 = arith.select %26, %216, %214 : vector<3x8x128xi1>, vector<3x8x128xf32>
    %218 = vector.extract_strided_slice %210 {offsets = [0, 1, 0], sizes = [3, 1, 128], strides = [1, 1, 1]} : vector<3x2x128xf32> to vector<3x1x128xf32>
    %219 = vector.extract_strided_slice %200 {offsets = [0, 1, 0], sizes = [3, 7, 128], strides = [1, 1, 1]} : vector<3x8x128xf32> to vector<3x7x128xf32>
    %220 = vector.extract_strided_slice %200 {offsets = [0, 7, 0], sizes = [3, 1, 128], strides = [1, 1, 1]} : vector<3x8x128xf32> to vector<3x1x128xf32>
    %221 = tpu.concatenate %219, %220 in 1 : vector<3x7x128xf32>, vector<3x1x128xf32> -> vector<3x8x128xf32>
    %222 = vector.shape_cast %218 : vector<3x1x128xf32> to vector<3x1x128xf32>
    %223 = vector.broadcast %222 : vector<3x1x128xf32> to vector<3x8x128xf32>
    %224 = arith.select %28, %223, %221 : vector<3x8x128xi1>, vector<3x8x128xf32>
    %225 = arith.addf %200, %217 : vector<3x8x128xf32>
    %226 = arith.addf %225, %224 : vector<3x8x128xf32>
    %cst_25 = arith.constant 0.111111112 : f32
    %227 = vector.broadcast %cst_25 : f32 to vector<3x8x128xf32>
    %228 = arith.mulf %226, %227 : vector<3x8x128xf32>
    %229 = arith.mulf %66, %104 : vector<3x8x128xf32>
    %230 = arith.subf %228, %229 : vector<3x8x128xf32>
    %cst_26 = arith.constant 2.000000e+00 : f32
    %231 = vector.broadcast %cst_26 : f32 to vector<3x8x128xf32>
    %232 = arith.mulf %231, %66 : vector<3x8x128xf32>
    %233 = arith.mulf %232, %104 : vector<3x8x128xf32>
    %cst_27 = arith.constant 9.99999974E-5 : f32
    %234 = vector.broadcast %cst_27 : f32 to vector<3x8x128xf32>
    %235 = arith.addf %233, %234 : vector<3x8x128xf32>
    %cst_28 = arith.constant 2.000000e+00 : f32
    %236 = vector.broadcast %cst_28 : f32 to vector<3x8x128xf32>
    %237 = arith.mulf %236, %230 : vector<3x8x128xf32>
    %cst_29 = arith.constant 8.99999984E-4 : f32
    %238 = vector.broadcast %cst_29 : f32 to vector<3x8x128xf32>
    %239 = arith.addf %237, %238 : vector<3x8x128xf32>
    %240 = arith.mulf %235, %239 : vector<3x8x128xf32>
    %241 = arith.mulf %66, %66 : vector<3x8x128xf32>
    %242 = arith.mulf %104, %104 : vector<3x8x128xf32>
    %243 = arith.addf %241, %242 : vector<3x8x128xf32>
    %cst_30 = arith.constant 9.99999974E-5 : f32
    %244 = vector.broadcast %cst_30 : f32 to vector<3x8x128xf32>
    %245 = arith.addf %243, %244 : vector<3x8x128xf32>
    %246 = arith.addf %146, %188 : vector<3x8x128xf32>
    %cst_31 = arith.constant 8.99999984E-4 : f32
    %247 = vector.broadcast %cst_31 : f32 to vector<3x8x128xf32>
    %248 = arith.addf %246, %247 : vector<3x8x128xf32>
    %249 = arith.mulf %245, %248 : vector<3x8x128xf32>
    %250 = tpu.reciprocal %249 : vector<3x8x128xf32> -> vector<3x8x128xf32>
    %251 = arith.mulf %240, %250 : vector<3x8x128xf32>
    %cst_32 = arith.constant 1.000000e+00 : f32
    %252 = vector.broadcast %cst_32 : f32 to vector<3x8x128xf32>
    %253 = arith.subf %252, %251 : vector<3x8x128xf32>
    %cst_33 = arith.constant 5.000000e-01 : f32
    %254 = vector.broadcast %cst_33 : f32 to vector<3x8x128xf32>
    %255 = arith.mulf %253, %254 : vector<3x8x128xf32>
    %cst_34 = arith.constant 0.000000e+00 : f32
    %cst_35 = arith.constant 1.000000e+00 : f32
    %256 = vector.broadcast %cst_34 : f32 to vector<3x8x128xf32>
    %257 = arith.maximumf %256, %255 : vector<3x8x128xf32>
    %258 = vector.broadcast %cst_35 : f32 to vector<3x8x128xf32>
    %259 = arith.minimumf %258, %257 : vector<3x8x128xf32>
    %cst_36 = arith.constant dense<0.000000e+00> : vector<8x128xf32>
    %260 = vector.multi_reduction <add>, %259, %cst_36 [0] : vector<3x8x128xf32> to vector<8x128xf32>
    %261 = vector.shape_cast %260 : vector<8x128xf32> to vector<1x8x128xf32>
    %cst_37 = arith.constant 0.333333343 : f32
    %262 = vector.broadcast %cst_37 : f32 to vector<1x8x128xf32>
    %263 = arith.mulf %261, %262 : vector<1x8x128xf32>
    %cst_38 = arith.constant 8.500000e-01 : f32
    %264 = vector.broadcast %cst_38 : f32 to vector<1x8x128xf32>
    %265 = arith.mulf %264, %263 : vector<1x8x128xf32>
    %cst_39 = arith.constant 1.500000e-01 : f32
    %266 = vector.broadcast %cst_39 : f32 to vector<1x8x128xf32>
    %267 = arith.mulf %266, %13 : vector<1x8x128xf32>
    %268 = arith.addf %265, %267 : vector<1x8x128xf32>
    %c0_40 = arith.constant 0 : index
    %c0_41 = arith.constant 0 : index
    %c0_42 = arith.constant 0 : index
    %c0_43 = arith.constant 0 : index
    %269 = vector.load %arg6[%c0_40, %c0_41, %c0_42, %c0_43] : memref<1x1x8x128xf32, #tpu.memory_space<vmem>>, vector<1x1x8x128xf32>
    %270 = vector.shape_cast %269 : vector<1x1x8x128xf32> to vector<1x8x128xf32>
    %271 = vector.shape_cast %268 : vector<1x8x128xf32> to vector<1x1x8x128xf32>
    tpu.vector_store %arg6[%c0_40, %c0_41, %c0_42, %c0_43], %271 {strides = array<i32>} : memref<1x1x8x128xf32, #tpu.memory_space<vmem>>, vector<1x1x8x128xf32>,
    return
  }
  func.func @transform_0(%arg0: i32, %arg1: i32) -> (i32, i32, i32, i32) {
    %c0_i32 = arith.constant 0 : i32
    %c0_i32_0 = arith.constant 0 : i32
    %c0_i32_1 = arith.constant 0 : i32
    return %arg0, %c0_i32, %arg1, %c0_i32_0 : i32, i32, i32, i32
  }
  func.func @transform_1(%arg0: i32, %arg1: i32) -> (i32, i32, i32, i32) {
    %c0_i32 = arith.constant 0 : i32
    %c0_i32_0 = arith.constant 0 : i32
    %c0_i32_1 = arith.constant 0 : i32
    return %arg0, %c0_i32, %arg1, %c0_i32_0 : i32, i32, i32, i32
  }
  func.func @transform_2(%arg0: i32, %arg1: i32) -> (i32, i32, i32, i32, i32) {
    %c0_i32 = arith.constant 0 : i32
    %c0_i32_0 = arith.constant 0 : i32
    %c0_i32_1 = arith.constant 0 : i32
    %c0_i32_2 = arith.constant 0 : i32
    return %arg0, %arg1, %c0_i32, %c0_i32_0, %c0_i32_1 : i32, i32, i32, i32, i32
  }
  func.func @transform_3(%arg0: i32, %arg1: i32) -> (i32, i32, i32, i32, i32) {
    %c0_i32 = arith.constant 0 : i32
    %c0_i32_0 = arith.constant 0 : i32
    %c0_i32_1 = arith.constant 0 : i32
    %c0_i32_2 = arith.constant 0 : i32
    return %arg0, %arg1, %c0_i32, %c0_i32_0, %c0_i32_1 : i32, i32, i32, i32, i32
  }
  func.func @transform_4(%arg0: i32, %arg1: i32) -> (i32, i32, i32, i32) {
    %c0_i32 = arith.constant 0 : i32
    %c0_i32_0 = arith.constant 0 : i32
    %c0_i32_1 = arith.constant 0 : i32
    return %arg0, %c0_i32, %arg1, %c0_i32_0 : i32, i32, i32, i32
  }
}

</mosaic_0001>

<bundles_post_ra>
// kernel: _dssim_l1_impl.1
= control target key start
LH: loop header
LB: loop body
LE: loop exit
PB: predicated region body
PF: predicated region fallthrough
CT: control target
= control target key end

     0   :  { %9 = vsyncpa [#allocation5], 0  ;;  %s2542_s0 = inlined_call_operand.vmem [shape: f32[2,3,16,128], index: 0, kind: input, shape index: {}]   ;;  %s2543_s1 = inlined_call_operand.vmem [shape: f32[2,3,16,128], index: 1, kind: input, shape index: {}]   ;;  %s2544_s2 = inlined_call_operand.vmem [shape: f32[2,2,3,2,128], index: 2, kind: input, shape index: {}]   ;;  %s2545_s3 = inlined_call_operand.vmem [shape: f32[2,2,3,2,128], index: 3, kind: input, shape index: {}]   ;;  %s2546_s4 = inlined_call_operand.hbm [shape: f32[2,1,16,128], index: 4, kind: output, shape index: {}]  }
   0x1   :  { %11 = vsyncpa [#allocation5 + $0x1], 0  ;;  %s1596_s15 = smov 0   ;;  %s1598_s16 = smov 0  }
   0x2   :  { %s1600_s17 = smov 0   ;;  %s1602_s18 = smov 0  }
   0x3   :  { %s1604_s19 = smov 0   ;;  %s1606_s20 = smov 0  }
   0x4   :  { %s1608_s21 = smov 0   ;;  %s1610_s22 = smov 0  }
   0x5 LB: > { %s1365_s23 = sadd.s32 4294967295, %s1566_s22   ;;  %s1366_s24 = sadd.s32 4294967294, %s1566_s22   ;;  %s1566_s22 = sphi %s1610_s22, %s17_s22   ;;  %s1562_s21 = sphi %s1608_s21, %s2556_s21   ;;  %s1558_s20 = sphi %s1606_s20, %s2555_s20   ;;  %s1554_s19 = sphi %s1604_s19, %s2554_s19   ;;  %s1550_s18 = sphi %s1602_s18, %s2553_s18   ;;  %s1546_s17 = sphi %s1600_s17, %s2552_s17   ;;  %s1542_s16 = sphi %s1598_s16, %s2551_s16   ;;  %s1538_s15 = sphi %s1596_s15, %s2550_s15  }
   0x6   : > { %s26_s25 = sadd.s32 1, %s1558_s20  ;;  %s29_s26 = sadd.s32 1, %s1562_s21 }
   0x7   : > { %p27_p0 = scmp.ge.s32.totalorder %s26_s25, 2  ;;  %p45_p1 = scmp.ne.s32.totalorder %s1546_s17, %s1542_s16 }
   0x8   : > { %p46_p2 = scmp.eq.s32.totalorder %s1566_s22, 0  ;;  %p161_p5 = scmp.eq.s32.totalorder %s1365_s23, 3 }
   0x9   : > { %s2558_s25 = smov (%p27_p0, %s26_s25), 0  ;;  %s2560_s26 = smov (!%p27_p0, %s29_s26), %s1562_s21 }
   0xa   : > { %s34_s27 = ssub.s32 %s1558_s20, %s2558_s25  ;;  %p1648_p3 = por %p46_p2, %p45_p1 }
   0xb   : > { %p31_p4 = scmp.ge.s32.totalorder %s2560_s26, 2  ;;  %p166_p6 = scmp.ne.s32.totalorder %s1542_s16, %s1538_s15 }
   0xc   : > { %p167_p7 = scmp.eq.s32.totalorder %s1366_s24, 3  ;;  %p1656_p8 = por %p161_p5, %p45_p1 }
   0xd   : > { %s2562_s26 = smov (%p31_p4, %s2560_s26), 0  ;;  %s38_s7 = sadd.s32 1, %s1546_s17 }
   0xe   : > { %p1660_p9 = por %p167_p7, %p166_p6  ;;  %s33_s5 = ssub.s32 %s1562_s21, %s2562_s26 }
   0xf   : > { %s35_s6 = sor.u32 %s34_s27, %s33_s5  ;;  %p1368_p11 = scmp.ge.s32.totalorder %s1566_s22, 4 }
  0x10   : > { %p36_p10 = scmp.eq.s32.totalorder %s35_s6, 0 }
  0x11   : > { %183 = sbr.rel (%p1368_p11) target bundleno = 42 (0x2a), region = 16 }
  0x12   : > { %s1668_s8 = scalar_select %p36_p10, %s1546_s17, %s38_s7  }
  0x18   : > { %186 = sbr.rel (!%p1648_p3) target bundleno = 33 (0x21), region = 20  ;;  %s188_s9 = sand.u32 (%p1648_p3), 1, %s1546_s17  }
  0x19   : > { %s1381_s10 = smul.u32 (%p1648_p3), 6, %s1562_s21 }
  0x1a   : > { %s1380_s11 = smul.u32 (%p1648_p3), 24, %s188_s9 }
  0x1b   : > { %s192_s12 = sadd.s32 (%p1648_p3), %s1558_s20, %s1381_s10 }
  0x1c   : > { %s1369_s13 = sshll.u32 (%p1648_p3), %s192_s12, 3  ;;  %s190_s27 = scalar_lea.vmem (%p1648_p3), [#allocation2], %s1380_s11 }
  0x1d   : > { %s194_s24 = scalar_lea.vmem (%p1648_p3), %s2542_s0, %s1369_s13 }
  0x1e   : > { %v226_v0 = vld [vmem:[%s194_s24] sm:$0xff] (%p1648_p3)  ;;  %v228_v1 = vld [vmem:[%s194_s24 + $0x10] sm:$0xff] (%p1648_p3) }
  0x1f   : > { %v230_v2 = vld [vmem:[%s194_s24 + $0x20] sm:$0xff]  ;;  %227 = vst [vmem:[%s190_s27] sm:$0xff] %v226_v0  ;;  %229 = vst [vmem:[%s190_s27 + $0x8] sm:$0xff] %v228_v1 }
  0x20   : > { %231 = vst [vmem:[%s190_s27 + $0x10] sm:$0xff] %v230_v2 }
  0x21 PF: > { %237 = sbr.rel (!%p1648_p3) target bundleno = 42 (0x2a), region = 58  ;;  %s239_s5 = sand.u32 (%p1648_p3), 1, %s1546_s17  }
  0x22   : > { %s1383_s6 = smul.u32 (%p1648_p3), 6, %s1562_s21 }
  0x23   : > { %s1382_s7 = smul.u32 (%p1648_p3), 24, %s239_s5 }
  0x24   : > { %s243_s9 = sadd.s32 (%p1648_p3), %s1558_s20, %s1383_s6 }
  0x25   : > { %s1370_s10 = sshll.u32 (%p1648_p3), %s243_s9, 3  ;;  %s241_s11 = scalar_lea.vmem (%p1648_p3), [#allocation3], %s1382_s7 }
  0x26   : > { %s245_s14 = scalar_lea.vmem (%p1648_p3), %s2543_s1, %s1370_s10 }
  0x27   : > { %v277_v3 = vld [vmem:[%s245_s14] sm:$0xff] (%p1648_p3)  ;;  %v279_v4 = vld [vmem:[%s245_s14 + $0x10] sm:$0xff] (%p1648_p3) }
  0x28   : > { %v281_v5 = vld [vmem:[%s245_s14 + $0x20] sm:$0xff]  ;;  %278 = vst [vmem:[%s241_s11] sm:$0xff] %v277_v3  ;;  %280 = vst [vmem:[%s241_s11 + $0x8] sm:$0xff] %v279_v4 }
  0x29   : > { %282 = vst [vmem:[%s241_s11 + $0x10] sm:$0xff] %v281_v5 }
  0x2a PF: > { %p1371_p12 = scmp.ge.s32.totalorder %s1566_s22, 1  ;;  %p311_p13 = scmp.lt.s32.totalorder %s1566_s22, 5 }
  0x2c   : > { %p312_p0 = pnand %p1371_p12, %p311_p13 }
  0x2d   : > { %s1690_s28 = sand.u32 (!%p312_p0), 1, %s1542_s16   ;;  %p372_p1 = scmp.lt.s32.totalorder (!%p312_p0), %s1554_s19, 1  ;;  %v411_v34 = vlaneseq (!%p312_p0)  ;;  %vm444_vm0 = vcmask (!%p312_p0), 1039360   ;;  %vm431_vm1 = vcmask (!%p312_p0), 7168   ;;  %vm508_vm4 = vcmask (!%p312_p0), 1040384  }
  0x2e   : > { %315 = sbr.rel (%p312_p0) target bundleno = 338 (0x152), region = 104  ;;  %p374_p2 = scmp.lt.s32.totalorder (!%p312_p0), %s1550_s18, 1  ;;  %vm533_vm5 = vcmask (!%p312_p0), 1046528  }
  0x2f   : > { %s1384_s23 = smul.u32 (!%p312_p0), 24, %s1690_s28  ;;  %s1568_s5 = smov (!%p312_p0), 127   ;;  %v1927_v36 = vand.u32 (!%p312_p0), 127, %v411_v34 }
  0x30   : > { %s1569_s6 = smov (!%p312_p0), 1  }
  0x31   : > { %s1695_s24 = scalar_lea.vmem (!%p312_p0), [#allocation2], %s1384_s23  ;;  %s1713_s13 = scalar_lea.vmem (!%p312_p0), [#allocation3], %s1384_s23  ;;  %vm413_vm2 = vcmp.eq.s32.totalorder (!%p312_p0), %v1927_v36, 0  ;;  %vm414_vm3 = vcmp.eq.s32.totalorder (!%p312_p0), %v1927_v36, 127 }
  0x32   : > { %v1698_v6 = vld [vmem:[%s1695_s24] sm:$0xff] (!%p312_p0)  ;;  %v1707_v7 = vld [vmem:[%s1695_s24 + $0x8] sm:$0xff] (!%p312_p0)  ;;  %v1716_v8 = vld [vmem:[%s1713_s13 + $0x8] sm:$0xff] (!%p312_p0)  ;;  %s1570_s23 = smov (!%p312_p0), [#allocation4]  }
  0x33   : > { %435 = vrot.lane.b32.xlu1 (!%p312_p0), %v1698_v6, %s1568_s5  ;;  %422 = vrot.lane.b32.xlu0 (!%p312_p0), %v1698_v6, %s1569_s6  ;;  %v1719_v9 = vld [vmem:[%s1713_s13] sm:$0xff] (!%p312_p0)  ;;  %v1775_v15 = vld [vmem:[%s1713_s13 + $0x10] sm:$0xff] (!%p312_p0)  ;;  %v1783_v16 = vmul.f32 (!%p312_p0), %v1707_v7, %v1707_v7  ;;  %v1787_v17 = vmul.f32 (!%p312_p0), %v1698_v6, %v1698_v6  ;;  %v1799_v18 = vmul.f32 (!%p312_p0), %v1716_v8, %v1716_v8 }
  0x34   : > { %v1768_v14 = vld [vmem:[%s1695_s24 + $0x10] sm:$0xff] (!%p312_p0)  ;;  %v1803_v19 = vmul.f32 (!%p312_p0), %v1719_v9, %v1719_v9  ;;  %v1869_v27 = vmul.f32 (!%p312_p0), %v1775_v15, %v1775_v15  ;;  %v1893_v30 = vmul.f32 (!%p312_p0), %v1716_v8, %v1707_v7  ;;  %v1897_v31 = vmul.f32 (!%p312_p0), %v1719_v9, %v1698_v6 }
  0x35   : > { %s373_s27 = scalar_select %p372_p1, %s1554_s19, 1  ;;  %v1861_v26 = vmul.f32 %v1768_v14, %v1768_v14  ;;  %v1925_v35 = vmul.f32 %v1775_v15, %v1768_v14 }
  0x36   : > { %s375_s7 = scalar_select %p374_p2, %s1550_s18, 1 }
  0x37   : > { %s1386_s9 = smul.u32 6, %s373_s27  ;;  %437 = vrot.lane.b32.xlu1 %v1707_v7, %s1568_s5  ;;  %424 = vrot.lane.b32.xlu0 %v1707_v7, %s1569_s6 }
  0x38   : > { %s1385_s10 = smul.u32 3, %s375_s7 }
  0x3a   : > { %s378_s12 = sadd.s32 %s1386_s9, %s1385_s10  ;;  %s1476_s9 = sshll.u32 %s1570_s23, 4  ;;  %s1477_s9 = int_to_ptr.vmem [resolvable:$false] %s1476_s9 }
  0x3b   : > { %s1373_s14 = sshll.u32 %s378_s12, 1  ;;  %566 = vrot.lane.b32.xlu1 %v1716_v8, %s1569_s6  ;;  %564 = vrot.lane.b32.xlu0 %v1719_v9, %s1569_s6 }
  0x3c   : > { %s1728_s7 = scalar_lea.vmem %s2544_s2, %s1373_s14  ;;  %s1747_s10 = scalar_lea.vmem %s2545_s3, %s1373_s14 }
  0x3d   : > { %v1735_v10 = vld [vmem:[%s1728_s7 + $0x2] sm:$0x3]  ;;  %v1738_v11 = vld [vmem:[%s1728_s7] sm:$0x3]  ;;  %v1814_v20 = vld [vmem:[%s1728_s7 + $0x4] sm:$0x3] }
  0x3e   : > { %v1754_v12 = vld [vmem:[%s1747_s10 + $0x2] sm:$0x3]  ;;  %v1757_v13 = vld [vmem:[%s1747_s10] sm:$0x3]  ;;  %v1821_v21 = vld [vmem:[%s1747_s10 + $0x4] sm:$0x3]  ;;  %v1829_v22 = vmul.f32 %v1735_v10, %v1735_v10  ;;  %v1833_v23 = vmul.f32 %v1738_v11, %v1738_v11  ;;  %v1877_v28 = vmul.f32 %v1814_v20, %v1814_v20 }
  0x3f   : > { %578 = vrot.lane.b32.xlu1 %v1716_v8, %s1568_s5  ;;  %576 = vrot.lane.b32.xlu0 %v1719_v9, %s1568_s5  ;;  %v1845_v24 = vmul.f32 %v1754_v12, %v1754_v12  ;;  %v1849_v25 = vmul.f32 %v1757_v13, %v1757_v13  ;;  %v1885_v29 = vmul.f32 %v1821_v21, %v1821_v21  ;;  %s1478_s10 = scalar_lea.vmem %s1477_s9, 256 }
  0x40   : > { %v1909_v32 = vmul.f32 %v1754_v12, %v1735_v10  ;;  %v1913_v33 = vmul.f32 %v1757_v13, %v1738_v11  ;;  %v1935_v37 = vmul.f32 %v1821_v21, %v1814_v20 }
  0x43   : > { %465 = vrot.lane.b32.xlu1 %v1735_v10, %s1569_s6  ;;  %463 = vrot.lane.b32.xlu0 %v1738_v11, %s1569_s6 }
  0x47   : > { %477 = vrot.lane.b32.xlu1 %v1735_v10, %s1568_s5  ;;  %475 = vrot.lane.b32.xlu0 %v1738_v11, %s1568_s5 }
  0x4b   : > { %605 = vrot.lane.b32.xlu1 %v1754_v12, %s1569_s6  ;;  %603 = vrot.lane.b32.xlu0 %v1757_v13, %s1569_s6 }
  0x4f   : > { %617 = vrot.lane.b32.xlu1 %v1754_v12, %s1568_s5  ;;  %615 = vrot.lane.b32.xlu0 %v1757_v13, %s1568_s5 }
  0x53   : > { %439 = vrot.lane.b32.xlu1 %v1768_v14, %s1568_s5  ;;  %426 = vrot.lane.b32.xlu0 %v1768_v14, %s1569_s6 }
  0x57   : > { %580 = vrot.lane.b32.xlu1 %v1775_v15, %s1568_s5  ;;  %568 = vrot.lane.b32.xlu0 %v1775_v15, %s1569_s6 }
  0x5b   : > { %710 = vrot.lane.b32.xlu1 %v1783_v16, %s1569_s6  ;;  %708 = vrot.lane.b32.xlu0 %v1787_v17, %s1569_s6 }
  0x5f   : > { %722 = vrot.lane.b32.xlu1 %v1783_v16, %s1568_s5  ;;  %720 = vrot.lane.b32.xlu0 %v1787_v17, %s1568_s5 }
  0x63   : > { %860 = vrot.lane.b32.xlu1 %v1799_v18, %s1569_s6  ;;  %858 = vrot.lane.b32.xlu0 %v1803_v19, %s1569_s6 }
  0x67   : > { %872 = vrot.lane.b32.xlu1 %v1799_v18, %s1568_s5  ;;  %870 = vrot.lane.b32.xlu0 %v1803_v19, %s1568_s5 }
  0x6b   : > { %479 = vrot.lane.b32.xlu1 %v1814_v20, %s1568_s5  ;;  %467 = vrot.lane.b32.xlu0 %v1814_v20, %s1569_s6 }
  0x6f   : > { %619 = vrot.lane.b32.xlu1 %v1821_v21, %s1568_s5  ;;  %607 = vrot.lane.b32.xlu0 %v1821_v21, %s1569_s6 }
  0x73   : > { %749 = vrot.lane.b32.xlu1 %v1829_v22, %s1569_s6  ;;  %747 = vrot.lane.b32.xlu0 %v1833_v23, %s1569_s6 }
  0x77   : > { %761 = vrot.lane.b32.xlu1 %v1829_v22, %s1568_s5  ;;  %759 = vrot.lane.b32.xlu0 %v1833_v23, %s1568_s5 }
  0x7b   : > { %899 = vrot.lane.b32.xlu1 %v1845_v24, %s1569_s6  ;;  %897 = vrot.lane.b32.xlu0 %v1849_v25, %s1569_s6 }
  0x7f   : > { %911 = vrot.lane.b32.xlu1 %v1845_v24, %s1568_s5  ;;  %909 = vrot.lane.b32.xlu0 %v1849_v25, %s1568_s5 }
  0x83   : > { %724 = vrot.lane.b32.xlu1 %v1861_v26, %s1568_s5  ;;  %712 = vrot.lane.b32.xlu0 %v1861_v26, %s1569_s6 }
  0x87   : > { %874 = vrot.lane.b32.xlu1 %v1869_v27, %s1568_s5  ;;  %862 = vrot.lane.b32.xlu0 %v1869_v27, %s1569_s6 }
  0x8b   : > { %763 = vrot.lane.b32.xlu1 %v1877_v28, %s1568_s5  ;;  %751 = vrot.lane.b32.xlu0 %v1877_v28, %s1569_s6 }
  0x8f   : > { %913 = vrot.lane.b32.xlu1 %v1885_v29, %s1568_s5  ;;  %901 = vrot.lane.b32.xlu0 %v1885_v29, %s1569_s6 }
  0x93   : > { %1010 = vrot.lane.b32.xlu1 %v1893_v30, %s1569_s6  ;;  %1008 = vrot.lane.b32.xlu0 %v1897_v31, %s1569_s6 }
  0x97   : > { %1022 = vrot.lane.b32.xlu1 %v1893_v30, %s1568_s5  ;;  %1020 = vrot.lane.b32.xlu0 %v1897_v31, %s1568_s5 }
  0x9b   : > { %1049 = vrot.lane.b32.xlu1 %v1909_v32, %s1569_s6  ;;  %1047 = vrot.lane.b32.xlu0 %v1913_v33, %s1569_s6 }
  0x9f   : > { %1061 = vrot.lane.b32.xlu1 %v1909_v32, %s1568_s5  ;;  %1059 = vrot.lane.b32.xlu0 %v1913_v33, %s1568_s5 }
  0xa3   : > { %1024 = vrot.lane.b32.xlu1 %v1925_v35, %s1568_s5  ;;  %1012 = vrot.lane.b32.xlu0 %v1925_v35, %s1569_s6 }
  0xa5   : > { %v436_v38 = vpop.permute.xlu1 %435  ;;  %v423_v39 = vpop.permute.xlu0 %422 }
  0xa6   : > { %v445_v40 = vsel %vm444_vm0, %v436_v38, %v1698_v6  ;;  %v432_v41 = vsel %vm431_vm1, %v1698_v6, %v423_v39  ;;  %v1987_v38 = vshrl.u32 %v411_v34, 7 }
  0xa7   : > { %v448_v42 = vsel %vm413_vm2, %v445_v40, %v432_v41  ;;  %v451_v43 = vsel %vm414_vm3, %v432_v41, %v445_v40  ;;  %1063 = vrot.lane.b32.xlu1 %v1935_v37, %s1568_s5  ;;  %1051 = vrot.lane.b32.xlu0 %v1935_v37, %s1569_s6  ;;  %s1376_s5 = sshll.u32 %s1554_s19, 1  ;;  %s1208_s19 = scalar_lea.sflag [#allocation5], %s1690_s28 }
  0xa8   : > { %v454_v44 = vadd.f32 %v448_v42, %v1698_v6  ;;  %vm417_vm6 = vcmp.eq.s32.totalorder %v1987_v38, 0  ;;  %vm418_vm7 = vcmp.eq.s32.totalorder %v1987_v38, 7  ;;  %s1219_s6 = sadd.s32 %s1550_s18, %s1376_s5 }
  0xa9   : > { %v438_v45 = vpop.permute.xlu1 %437  ;;  %v425_v46 = vpop.permute.xlu0 %424  ;;  %s1377_s12 = sshll.u32 %s1219_s6, 7 }
  0xaa   : > { %v1952_v47 = vadd.f32 %v454_v44, %v451_v43  ;;  %v446_v48 = vsel %vm444_vm0, %v438_v45, %v1707_v7  ;;  %v433_v49 = vsel %vm431_vm1, %v1707_v7, %v425_v46  ;;  %s2488_s7 = scalar_lea.hbm %s2546_s4, %s1377_s12 }
  0xab   : > { %v449_v50 = vsel %vm413_vm2, %v446_v48, %v433_v49  ;;  %v452_v51 = vsel %vm414_vm3, %v433_v49, %v446_v48 }
  0xac   : > { %v455_v52 = vadd.f32 %v449_v50, %v1707_v7  ;;  %v502_v39 = vrot.slane %v1952_v47, 7  ;;  %v527_v40 = vrot.slane %v1952_v47, 1 }
  0xad   : > { %v567_v53 = vpop.permute.xlu1 %566  ;;  %v565_v54 = vpop.permute.xlu0 %564 }
  0xae   : > { %v1963_v55 = vadd.f32 %v455_v52, %v452_v51  ;;  %v574_v58 = vsel %vm431_vm1, %v1716_v8, %v567_v53  ;;  %v573_v59 = vsel %vm431_vm1, %v1719_v9, %v565_v54  ;;  %v2010_v51 = vsub.s32 0, %v1987_v38 }
  0xaf   : > { %v2013_v52 = vsub.s32 1, %v1987_v38 }
  0xb0   : > { %v503_v41 = vrot.slane %v1963_v55, 7 }
  0xb1   : > { %v579_v56 = vpop.permute.xlu1 %578  ;;  %v577_v57 = vpop.permute.xlu0 %576 }
  0xb2   : > { %v586_v60 = vsel %vm444_vm0, %v579_v56, %v1716_v8  ;;  %v585_v61 = vsel %vm444_vm0, %v577_v57, %v1719_v9 }
  0xb3   : > { %v589_v62 = vsel %vm413_vm2, %v586_v60, %v574_v58  ;;  %v592_v63 = vsel %vm414_vm3, %v574_v58, %v586_v60  ;;  %v588_v0 = vsel %vm413_vm2, %v585_v61, %v573_v59  ;;  %v591_v1 = vsel %vm414_vm3, %v573_v59, %v585_v61 }
  0xb4   : > { %v595_v2 = vadd.f32 %v589_v62, %v1716_v8  ;;  %v594_v3 = vadd.f32 %v588_v0, %v1719_v9  ;;  %v528_v8 = vrot.slane %v1963_v55, 1  ;;  %v509_v59 = vsel %vm508_vm4, %v1952_v47, %v502_v39 }
  0xb5   : > { %v466_v4 = vpop.permute.xlu1 %465  ;;  %v464_v5 = vpop.permute.xlu0 %463  ;;  %v534_v60 = vsel %vm533_vm5, %v527_v40, %v1952_v47 }
  0xb6   : > { %v1983_v6 = vadd.f32 %v595_v2, %v592_v63  ;;  %v1985_v7 = vadd.f32 %v594_v3, %v591_v1  ;;  %v473_v43 = vsel %vm431_vm1, %v1735_v10, %v466_v4  ;;  %v472_v44 = vsel %vm431_vm1, %v1738_v11, %v464_v5 }
  0xb7   : > { %v535_v63 = vsel %vm533_vm5, %v528_v8, %v1963_v55 }
  0xb8   : > { %v643_v62 = vrot.slane %v1983_v6, 7  ;;  %v642_v4 = vrot.slane %v1985_v7, 7  ;;  %v666_v5 = vrot.slane %v1985_v7, 1 }
  0xb9   : > { %v478_v42 = vpop.permute.xlu1 %477  ;;  %v476_v9 = vpop.permute.xlu0 %475 }
  0xba   : > { %v485_v34 = vsel %vm444_vm0, %v478_v42, %v1735_v10  ;;  %v484_v45 = vsel %vm444_vm0, %v476_v9, %v1738_v11 }
  0xbb   : > { %v488_v46 = vsel %vm413_vm2, %v485_v34, %v473_v43  ;;  %v491_v48 = vsel %vm414_vm3, %v473_v43, %v485_v34  ;;  %v487_v49 = vsel %vm413_vm2, %v484_v45, %v472_v44  ;;  %v490_v50 = vsel %vm414_vm3, %v472_v44, %v484_v45 }
  0xbc   : > { %v494_v53 = vadd.f32 %v488_v46, %v1735_v10  ;;  %v493_v54 = vadd.f32 %v487_v49, %v1738_v11  ;;  %v667_v10 = vrot.slane %v1983_v6, 1  ;;  %v510_v11 = vsel %vm508_vm4, %v1963_v55, %v503_v41 }
  0xbd   : > { %v606_v56 = vpop.permute.xlu1 %605  ;;  %v604_v57 = vpop.permute.xlu0 %603 }
  0xbe   : > { %v497_v58 = vadd.f32 %v494_v53, %v491_v48  ;;  %v496_v61 = vadd.f32 %v493_v54, %v490_v50  ;;  %v613_v39 = vsel %vm431_vm1, %v1754_v12, %v606_v56  ;;  %v612_v40 = vsel %vm431_vm1, %v1757_v13, %v604_v57 }
  0xc0   : > { %v519_v0 = vrot.slane %v497_v58, %v2010_v51  ;;  %v544_v1 = vrot.slane %v497_v58, %v2013_v52  ;;  %v515_v2 = vrot.slane %v496_v61, %v2010_v51  ;;  %v540_v3 = vrot.slane %v496_v61, %v2013_v52 }
  0xc1   : > { %v618_v41 = vpop.permute.xlu1 %617  ;;  %v616_v8 = vpop.permute.xlu0 %615 }
  0xc2   : > { %v525_v42 = vsel %vm417_vm6, %v519_v0, %v510_v11  ;;  %v550_v9 = vsel %vm418_vm7, %v544_v1, %v535_v63  ;;  %v524_v43 = vsel %vm417_vm6, %v515_v2, %v509_v59  ;;  %v549_v44 = vsel %vm418_vm7, %v540_v3, %v534_v60 }
  0xc3   : > { %v553_v34 = vadd.f32 %v525_v42, %v1963_v55  ;;  %v552_v45 = vadd.f32 %v524_v43, %v1952_v47  ;;  %v625_v46 = vsel %vm444_vm0, %v618_v41, %v1754_v12  ;;  %v624_v48 = vsel %vm444_vm0, %v616_v8, %v1757_v13 }
  0xc4   : > { %v628_v49 = vsel %vm413_vm2, %v625_v46, %v613_v39  ;;  %v631_v50 = vsel %vm414_vm3, %v613_v39, %v625_v46  ;;  %v627_v53 = vsel %vm413_vm2, %v624_v48, %v612_v40  ;;  %v630_v55 = vsel %vm414_vm3, %v612_v40, %v624_v48 }
  0xc5   : > { %v556_v54 = vadd.f32 %v553_v34, %v550_v9  ;;  %v555_v47 = vadd.f32 %v552_v45, %v549_v44  ;;  %v634_v56 = vadd.f32 %v628_v49, %v1754_v12  ;;  %v633_v57 = vadd.f32 %v627_v53, %v1757_v13  ;;  %v440_v58 = vpop.permute.xlu1 %439  ;;  %v427_v59 = vpop.permute.xlu0 %426 }
  0xc6   : > { %v447_v60 = vsel %vm444_vm0, %v440_v58, %v1768_v14  ;;  %v434_v61 = vsel %vm431_vm1, %v1768_v14, %v427_v59  ;;  %v649_v0 = vsel %vm508_vm4, %v1983_v6, %v643_v62  ;;  %v673_v1 = vsel %vm533_vm5, %v667_v10, %v1983_v6 }
  0xc7   : > { %v637_v11 = vadd.f32 %v634_v56, %v631_v50  ;;  %v636_v63 = vadd.f32 %v633_v57, %v630_v55  ;;  %v450_v12 = vsel %vm413_vm2, %v447_v60, %v434_v61  ;;  %v453_v13 = vsel %vm414_vm3, %v434_v61, %v447_v60 }
  0xc8   : > { %v648_v39 = vsel %vm508_vm4, %v1985_v7, %v642_v4  ;;  %v672_v40 = vsel %vm533_vm5, %v666_v5, %v1985_v7  ;;  %v456_v42 = vadd.f32 %v450_v12, %v1768_v14  ;;  %v559_v43 = vmul.f32 0.11111111, %v556_v54 }
  0xc9   : > { %v658_v2 = vrot.slane %v637_v11, %v2010_v51  ;;  %v682_v3 = vrot.slane %v637_v11, %v2013_v52  ;;  %v581_v62 = vpop.permute.xlu1 %580  ;;  %v569_v41 = vpop.permute.xlu0 %568  ;;  %v654_v10 = vrot.slane %v636_v63, %v2010_v51  ;;  %v678_v8 = vrot.slane %v636_v63, %v2013_v52 }
  0xca   : > { %v587_v9 = vsel %vm444_vm0, %v581_v62, %v1775_v15  ;;  %v575_v5 = vsel %vm431_vm1, %v1775_v15, %v569_v41  ;;  %v2097_v46 = vadd.f32 %v456_v42, %v453_v13  ;;  %v558_v48 = vmul.f32 0.11111111, %v555_v47 }
  0xcb   : > { %v664_v44 = vsel %vm417_vm6, %v658_v2, %v649_v0  ;;  %v688_v4 = vsel %vm418_vm7, %v682_v3, %v673_v1  ;;  %v663_v45 = vsel %vm417_vm6, %v654_v10, %v648_v39  ;;  %v687_v14 = vsel %vm418_vm7, %v678_v8, %v672_v40 }
  0xcc   : > { %v691_v34 = vadd.f32 %v664_v44, %v1983_v6  ;;  %v690_v49 = vadd.f32 %v663_v45, %v1985_v7  ;;  %v590_v50 = vsel %vm413_vm2, %v587_v9, %v575_v5  ;;  %v593_v53 = vsel %vm414_vm3, %v575_v5, %v587_v9 }
  0xcd   : > { %v711_v55 = vpop.permute.xlu1 %710  ;;  %v709_v54 = vpop.permute.xlu0 %708  ;;  %v596_v56 = vadd.f32 %v590_v50, %v1775_v15  ;;  %v1150_v58 = vmul.f32 2.0, %v559_v43  ;;  %v1149_v61 = vmul.f32 2.0, %v558_v48  ;;  %v2115_v2 = vmul.f32 %v559_v43, %v559_v43 }
  0xce   : > { %v694_v6 = vadd.f32 %v691_v34, %v688_v4  ;;  %v693_v57 = vadd.f32 %v690_v49, %v687_v14  ;;  %v2117_v3 = vmul.f32 %v558_v48, %v558_v48  ;;  %v718_v40 = vsel %vm431_vm1, %v1783_v16, %v711_v55 }
  0xcf   : > { %v2105_v60 = vadd.f32 %v596_v56, %v593_v53  ;;  %v717_v8 = vsel %vm431_vm1, %v1787_v17, %v709_v54  ;;  %v504_v45 = vrot.slane %v2097_v46, 7 }
  0xd0   : > { %v697_v59 = vmul.f32 0.11111111, %v694_v6  ;;  %v696_v47 = vmul.f32 0.11111111, %v693_v57 }
  0xd1   : > { %v723_v11 = vpop.permute.xlu1 %722  ;;  %v721_v7 = vpop.permute.xlu0 %720 }
  0xd2   : > { %v2107_v63 = vmul.f32 %v1150_v58, %v697_v59  ;;  %v2109_v0 = vmul.f32 %v1149_v61, %v696_v47  ;;  %v730_v1 = vsel %vm444_vm0, %v723_v11, %v1783_v16  ;;  %v729_v15 = vsel %vm444_vm0, %v721_v7, %v1787_v17 }
  0xd3   : > { %v2119_v39 = vmul.f32 %v697_v59, %v697_v59  ;;  %v2123_v62 = vmul.f32 %v696_v47, %v696_v47  ;;  %v2125_v41 = vmul.f32 %v697_v59, %v559_v43  ;;  %v2127_v10 = vmul.f32 %v696_v47, %v558_v48 }
  0xd4   : > { %v733_v42 = vsel %vm413_vm2, %v730_v1, %v718_v40  ;;  %v732_v44 = vsel %vm413_vm2, %v729_v15, %v717_v8  ;;  %v529_v48 = vrot.slane %v2097_v46, 1  ;;  %v736_v53 = vsel %vm414_vm3, %v718_v40, %v730_v1 }
  0xd5   : > { %v861_v12 = vpop.permute.xlu1 %860  ;;  %v859_v13 = vpop.permute.xlu0 %858  ;;  %v2135_v9 = vadd.f32 %v2119_v39, %v2115_v2  ;;  %v2141_v43 = vadd.f32 %v2123_v62, %v2117_v3  ;;  %v739_v34 = vadd.f32 %v733_v42, %v1783_v16  ;;  %v738_v14 = vadd.f32 %v732_v44, %v1787_v17 }
  0xd6   : > { %v735_v17 = vsel %vm414_vm3, %v717_v8, %v729_v15  ;;  %v644_v58 = vrot.slane %v2105_v60, 7  ;;  %v868_v61 = vsel %vm431_vm1, %v1799_v18, %v861_v12  ;;  %v511_v47 = vsel %vm508_vm4, %v2097_v46, %v504_v45 }
  0xd7   : > { %v2155_v6 = vadd.f32 %v739_v34, %v736_v53  ;;  %v2164_v59 = vadd.f32 %v738_v14, %v735_v17  ;;  %v668_v11 = vrot.slane %v2105_v60, 1  ;;  %v867_v7 = vsel %vm431_vm1, %v1803_v19, %v859_v13 }
  0xd9   : > { %v873_v4 = vpop.permute.xlu1 %872  ;;  %v871_v5 = vpop.permute.xlu0 %870  ;;  %v787_v13 = vrot.slane %v2155_v6, 7  ;;  %v786_v45 = vrot.slane %v2164_v59, 7 }
  0xda   : > { %v880_v55 = vsel %vm444_vm0, %v873_v4, %v1799_v18  ;;  %v879_v56 = vsel %vm444_vm0, %v871_v5, %v1803_v19  ;;  %v811_v5 = vrot.slane %v2155_v6, 1 }
  0xdb   : > { %v883_v1 = vsel %vm413_vm2, %v880_v55, %v868_v61  ;;  %v882_v42 = vsel %vm413_vm2, %v879_v56, %v867_v7 }
  0xdc   : > { %v889_v14 = vadd.f32 %v883_v1, %v1799_v18  ;;  %v888_v53 = vadd.f32 %v882_v42, %v1803_v19  ;;  %v650_v18 = vsel %vm508_vm4, %v2105_v60, %v644_v58  ;;  %v886_v19 = vsel %vm414_vm3, %v868_v61, %v880_v55 }
  0xdd   : > { %v480_v49 = vpop.permute.xlu1 %479  ;;  %v468_v50 = vpop.permute.xlu0 %467  ;;  %v817_v42 = vsel %vm533_vm5, %v811_v5, %v2155_v6 }
  0xde   : > { %v486_v54 = vsel %vm444_vm0, %v480_v49, %v1814_v20  ;;  %v474_v16 = vsel %vm431_vm1, %v1814_v20, %v468_v50  ;;  %v536_v49 = vsel %vm533_vm5, %v529_v48, %v2097_v46  ;;  %v674_v48 = vsel %vm533_vm5, %v668_v11, %v2105_v60 }
  0xdf   : > { %v489_v57 = vsel %vm413_vm2, %v486_v54, %v474_v16  ;;  %v492_v12 = vsel %vm414_vm3, %v474_v16, %v486_v54 }
  0xe0   : > { %v495_v15 = vadd.f32 %v489_v57, %v1814_v20 }
  0xe1   : > { %v620_v40 = vpop.permute.xlu1 %619  ;;  %v608_v8 = vpop.permute.xlu0 %607 }
  0xe2   : > { %v626_v44 = vsel %vm444_vm0, %v620_v40, %v1821_v21  ;;  %v614_v4 = vsel %vm431_vm1, %v1821_v21, %v608_v8  ;;  %v498_v34 = vadd.f32 %v495_v15, %v492_v12  ;;  %v810_v40 = vrot.slane %v2164_v59, 1 }
  0xe3   : > { %v629_v20 = vsel %vm413_vm2, %v626_v44, %v614_v4  ;;  %v632_v17 = vsel %vm414_vm3, %v614_v4, %v626_v44  ;;  %v793_v8 = vsel %vm508_vm4, %v2155_v6, %v787_v13  ;;  %v885_v12 = vsel %vm414_vm3, %v867_v7, %v879_v56 }
  0xe4   : > { %v635_v50 = vadd.f32 %v629_v20, %v1821_v21  ;;  %v523_v54 = vrot.slane %v498_v34, %v2010_v51  ;;  %v548_v16 = vrot.slane %v498_v34, %v2013_v52  ;;  %v2216_v4 = vadd.f32 %v889_v14, %v886_v19 }
  0xe5   : > { %v750_v57 = vpop.permute.xlu1 %749  ;;  %v748_v15 = vpop.permute.xlu0 %747  ;;  %v2218_v55 = vadd.f32 %v888_v53, %v885_v12  ;;  %v792_v13 = vsel %vm508_vm4, %v2164_v59, %v786_v45 }
  0xe6   : > { %v638_v21 = vadd.f32 %v635_v50, %v632_v17  ;;  %v526_v1 = vsel %vm417_vm6, %v523_v54, %v511_v47  ;;  %v551_v61 = vsel %vm418_vm7, %v548_v16, %v536_v49  ;;  %v757_v56 = vsel %vm431_vm1, %v1829_v22, %v750_v57 }
  0xe7   : > { %v554_v58 = vadd.f32 %v526_v1, %v2097_v46  ;;  %v756_v14 = vsel %vm431_vm1, %v1833_v23, %v748_v15  ;;  %v816_v54 = vsel %vm533_vm5, %v810_v40, %v2164_v59  ;;  %v937_v16 = vrot.slane %v2216_v4, 7 }
  0xe8   : > { %v662_v11 = vrot.slane %v638_v21, %v2010_v51  ;;  %v686_v44 = vrot.slane %v638_v21, %v2013_v52  ;;  %v936_v1 = vrot.slane %v2218_v55, 7  ;;  %v960_v12 = vrot.slane %v2218_v55, 1 }
  0xe9   : > { %v762_v47 = vpop.permute.xlu1 %761  ;;  %v760_v5 = vpop.permute.xlu0 %759  ;;  %v557_v34 = vadd.f32 %v554_v58, %v551_v61 }
  0xea   : > { %v665_v46 = vsel %vm417_vm6, %v662_v11, %v650_v18  ;;  %v769_v7 = vsel %vm444_vm0, %v762_v47, %v1829_v22  ;;  %v768_v45 = vsel %vm444_vm0, %v760_v5, %v1833_v23  ;;  %v689_v50 = vsel %vm418_vm7, %v686_v44, %v674_v48 }
  0xeb   : > { %v692_v20 = vadd.f32 %v665_v46, %v2105_v60  ;;  %v772_v49 = vsel %vm413_vm2, %v769_v7, %v757_v56  ;;  %v771_v60 = vsel %vm413_vm2, %v768_v45, %v756_v14  ;;  %v775_v57 = vsel %vm414_vm3, %v757_v56, %v769_v7 }
  0xec   : > { %v778_v53 = vadd.f32 %v772_v49, %v1829_v22  ;;  %v777_v15 = vadd.f32 %v771_v60, %v1833_v23  ;;  %v961_v48 = vrot.slane %v2216_v4, 1  ;;  %v560_v19 = vmul.f32 0.11111111, %v557_v34 }
  0xed   : > { %v695_v17 = vadd.f32 %v692_v20, %v689_v50  ;;  %v900_v18 = vpop.permute.xlu1 %899  ;;  %v898_v21 = vpop.permute.xlu0 %897  ;;  %v774_v40 = vsel %vm414_vm3, %v756_v14, %v768_v45 }
  0xee   : > { %v781_v22 = vadd.f32 %v778_v53, %v775_v57  ;;  %v780_v11 = vadd.f32 %v777_v15, %v774_v40  ;;  %v907_v61 = vsel %vm431_vm1, %v1845_v24, %v900_v18  ;;  %v906_v47 = vsel %vm431_vm1, %v1849_v25, %v898_v21 }
  0xef   : > { %v2253_v58 = vmul.f32 0.11111111, %v695_v17  ;;  %v2276_v50 = vmul.f32 %v560_v19, %v560_v19 }
  0xf0   : > { %v802_v44 = vrot.slane %v781_v22, %v2010_v51  ;;  %v826_v23 = vrot.slane %v781_v22, %v2013_v52  ;;  %v798_v5 = vrot.slane %v780_v11, %v2010_v51  ;;  %v822_v34 = vrot.slane %v780_v11, %v2013_v52 }
  0xf1   : > { %v912_v46 = vpop.permute.xlu1 %911  ;;  %v910_v56 = vpop.permute.xlu0 %909  ;;  %v2265_v7 = vmul.f32 %v2253_v58, %v2253_v58  ;;  %v2268_v20 = vmul.f32 %v2253_v58, %v560_v19 }
  0xf2   : > { %v808_v14 = vsel %vm417_vm6, %v802_v44, %v793_v8  ;;  %v919_v49 = vsel %vm444_vm0, %v912_v46, %v1845_v24  ;;  %v918_v45 = vsel %vm444_vm0, %v910_v56, %v1849_v25  ;;  %v832_v53 = vsel %vm418_vm7, %v826_v23, %v817_v42 }
  0xf3   : > { %v835_v60 = vadd.f32 %v808_v14, %v2155_v6  ;;  %v807_v17 = vsel %vm417_vm6, %v798_v5, %v792_v13  ;;  %v922_v57 = vsel %vm413_vm2, %v919_v49, %v907_v61  ;;  %v831_v8 = vsel %vm418_vm7, %v822_v34, %v816_v54 }
  0xf4   : > { %v834_v15 = vadd.f32 %v807_v17, %v2164_v59  ;;  %v928_v18 = vadd.f32 %v922_v57, %v1845_v24  ;;  %v921_v21 = vsel %vm413_vm2, %v918_v45, %v906_v47  ;;  %v925_v6 = vsel %vm414_vm3, %v907_v61, %v919_v49 }
  0xf5   : > { %v838_v22 = vadd.f32 %v835_v60, %v832_v53  ;;  %v927_v42 = vadd.f32 %v921_v21, %v1849_v25  ;;  %v725_v13 = vpop.permute.xlu1 %724  ;;  %v713_v40 = vpop.permute.xlu0 %712  ;;  %v2296_v11 = vadd.f32 %v2265_v7, %v2276_v50  ;;  %v924_v59 = vsel %vm414_vm3, %v906_v47, %v918_v45 }
  0xf6   : > { %v931_v54 = vadd.f32 %v928_v18, %v925_v6  ;;  %v731_v24 = vsel %vm444_vm0, %v725_v13, %v1861_v26  ;;  %v719_v44 = vsel %vm431_vm1, %v1861_v26, %v713_v40  ;;  %v837_v23 = vadd.f32 %v834_v15, %v831_v8 }
  0xf7   : > { %v943_v25 = vsel %vm508_vm4, %v2216_v4, %v937_v16  ;;  %v930_v61 = vadd.f32 %v927_v42, %v924_v59  ;;  %v734_v5 = vsel %vm413_vm2, %v731_v24, %v719_v44  ;;  %v967_v34 = vsel %vm533_vm5, %v961_v48, %v2216_v4 }
  0xf8   : > { %v952_v46 = vrot.slane %v931_v54, %v2010_v51  ;;  %v976_v47 = vrot.slane %v931_v54, %v2013_v52  ;;  %v740_v56 = vadd.f32 %v734_v5, %v1861_v26  ;;  %v942_v14 = vsel %vm508_vm4, %v2218_v55, %v936_v1 }
  0xf9   : > { %v966_v49 = vsel %vm533_vm5, %v960_v12, %v2218_v55  ;;  %v948_v16 = vrot.slane %v930_v61, %v2010_v51  ;;  %v972_v45 = vrot.slane %v930_v61, %v2013_v52  ;;  %v875_v53 = vpop.permute.xlu1 %874  ;;  %v863_v60 = vpop.permute.xlu0 %862  ;;  %v1151_v17 = vmul.f32 2.0, %v560_v19 }
  0xfa   : > { %v841_v48 = vmul.f32 0.11111111, %v838_v22  ;;  %v958_v57 = vsel %vm417_vm6, %v952_v46, %v943_v25  ;;  %v737_v26 = vsel %vm414_vm3, %v719_v44, %v731_v24  ;;  %v840_v8 = vmul.f32 0.11111111, %v837_v23 }
  0xfb   : > { %v985_v1 = vadd.f32 %v958_v57, %v2216_v4  ;;  %v957_v12 = vsel %vm417_vm6, %v948_v16, %v942_v14  ;;  %v881_v15 = vsel %vm444_vm0, %v875_v53, %v1869_v27  ;;  %v982_v18 = vsel %vm418_vm7, %v976_v47, %v967_v34 }
  0xfc   : > { %v984_v19 = vadd.f32 %v957_v12, %v2218_v55  ;;  %v743_v21 = vadd.f32 %v740_v56, %v737_v26  ;;  %v869_v22 = vsel %vm431_vm1, %v1869_v27, %v863_v60  ;;  %v981_v42 = vsel %vm418_vm7, %v972_v45, %v966_v49 }
  0xfd   : > { %v988_v6 = vadd.f32 %v985_v1, %v982_v18  ;;  %v884_v4 = vsel %vm413_vm2, %v881_v15, %v869_v22  ;;  %v764_v13 = vpop.permute.xlu1 %763  ;;  %v752_v40 = vpop.permute.xlu0 %751  ;;  %v2338_v54 = vmul.f32 %v1151_v17, %v2253_v58  ;;  %v847_v25 = vsub.f32 %v841_v48, %v2115_v2 }
  0xfe   : > { %v987_v59 = vadd.f32 %v984_v19, %v981_v42  ;;  %v890_v24 = vadd.f32 %v884_v4, %v1869_v27  ;;  %v770_v55 = vsel %vm444_vm0, %v764_v13, %v1877_v28  ;;  %v758_v23 = vsel %vm431_vm1, %v1877_v28, %v752_v40 }
  0xff   : > { %v991_v44 = vmul.f32 0.11111111, %v988_v6  ;;  %v846_v61 = vsub.f32 %v840_v8, %v2117_v3  ;;  %v773_v34 = vsel %vm413_vm2, %v770_v55, %v758_v23  ;;  %v788_v46 = vrot.slane %v743_v21, 7 }
 0x100   : > { %v990_v5 = vmul.f32 0.11111111, %v987_v59  ;;  %v887_v27 = vsel %vm414_vm3, %v869_v22, %v881_v15  ;;  %v779_v47 = vadd.f32 %v773_v34, %v1877_v28  ;;  %v776_v2 = vsel %vm414_vm3, %v758_v23, %v770_v55 }
 0x101   : > { %v997_v58 = vsub.f32 %v991_v44, %v2119_v39  ;;  %v914_v56 = vpop.permute.xlu1 %913  ;;  %v902_v14 = vpop.permute.xlu0 %901  ;;  %v893_v16 = vadd.f32 %v890_v24, %v887_v27  ;;  %v1171_v60 = vadd.f32 0.0001, %v2135_v9  ;;  %v1170_v28 = vadd.f32 0.0001, %v2141_v43 }
 0x102   : > { %v996_v49 = vsub.f32 %v990_v5, %v2123_v62  ;;  %v920_v3 = vsel %vm444_vm0, %v914_v56, %v1885_v29  ;;  %v782_v53 = vadd.f32 %v779_v47, %v776_v2  ;;  %v908_v39 = vsel %vm431_vm1, %v1885_v29, %v902_v14 }
 0x103   : > { %v1174_v45 = vadd.f32 %v997_v58, %v847_v25  ;;  %v923_v62 = vsel %vm413_vm2, %v920_v3, %v908_v39  ;;  %v812_v57 = vrot.slane %v743_v21, 1  ;;  %v794_v26 = vsel %vm508_vm4, %v743_v21, %v788_v46 }
 0x104   : > { %v1173_v17 = vadd.f32 %v996_v49, %v846_v61  ;;  %v806_v8 = vrot.slane %v782_v53, %v2010_v51  ;;  %v938_v18 = vrot.slane %v893_v16, 7  ;;  %v830_v19 = vrot.slane %v782_v53, %v2013_v52 }
 0x105   : > { %v1177_v48 = vadd.f32 0.0009, %v1174_v45  ;;  %v1011_v1 = vpop.permute.xlu1 %1010  ;;  %v1009_v12 = vpop.permute.xlu0 %1008  ;;  %v929_v9 = vadd.f32 %v923_v62, %v1885_v29  ;;  %v926_v6 = vsel %vm414_vm3, %v908_v39, %v920_v3  ;;  %v962_v40 = vrot.slane %v893_v16, 1 }
 0x106   : > { %v1176_v15 = vadd.f32 0.0009, %v1173_v17  ;;  %v809_v43 = vsel %vm417_vm6, %v806_v8, %v794_v26  ;;  %v818_v59 = vsel %vm533_vm5, %v812_v57, %v743_v21  ;;  %v944_v44 = vsel %vm508_vm4, %v893_v16, %v938_v18 }
 0x107   : > { %v2368_v22 = vmul.f32 %v1177_v48, %v1171_v60  ;;  %v836_v4 = vadd.f32 %v809_v43, %v743_v21  ;;  %v932_v13 = vadd.f32 %v929_v9, %v926_v6  ;;  %v833_v29 = vsel %vm418_vm7, %v830_v19, %v818_v59 }
 0x108   : > { %v2374_v42 = vmul.f32 %v1176_v15, %v1170_v28  ;;  %v1018_v5 = vsel %vm431_vm1, %v1893_v30, %v1011_v1  ;;  %v1017_v46 = vsel %vm431_vm1, %v1897_v31, %v1009_v12  ;;  %v968_v47 = vsel %vm533_vm5, %v962_v40, %v893_v16 }
 0x109   : > { %v1023_v24 = vpop.permute.xlu1 %1022  ;;  %v1021_v55 = vpop.permute.xlu0 %1020  ;;  %v956_v23 = vrot.slane %v932_v13, %v2010_v51  ;;  %v980_v25 = vrot.slane %v932_v13, %v2013_v52  ;;  %v839_v61 = vadd.f32 %v836_v4, %v833_v29  ;;  %v1172_v18 = vadd.f32 0.0001, %v2296_v11 }
 0x10a   : > { %v1030_v34 = vsel %vm444_vm0, %v1023_v24, %v1893_v30  ;;  %v1029_v21 = vsel %vm444_vm0, %v1021_v55, %v1897_v31  ;;  %1460 = vrcp.f32 %v2368_v22 }
 0x10b   : > { %v959_v58 = vsel %vm417_vm6, %v956_v23, %v944_v44  ;;  %v1033_v27 = vsel %vm413_vm2, %v1030_v34, %v1018_v5  ;;  %v1032_v49 = vsel %vm413_vm2, %v1029_v21, %v1017_v46  ;;  %v983_v45 = vsel %vm418_vm7, %v980_v25, %v968_v47 }
 0x10c   : > { %v986_v56 = vadd.f32 %v959_v58, %v893_v16  ;;  %v1039_v14 = vadd.f32 %v1033_v27, %v1893_v30  ;;  %v842_v53 = vmul.f32 0.11111111, %v839_v61  ;;  %v1036_v60 = vsel %vm414_vm3, %v1018_v5, %v1030_v34 }
 0x10d   : > { %v1050_v2 = vpop.permute.xlu1 %1049  ;;  %v1048_v3 = vpop.permute.xlu0 %1047  ;;  %v1038_v28 = vadd.f32 %v1032_v49, %v1897_v31  ;;  %v1035_v30 = vsel %vm414_vm3, %v1017_v46, %v1029_v21  ;;  %1462 = vrcp.f32 %v2374_v42  ;;  %v1156_v42 = vadd.f32 0.0001, %v2107_v63 }
 0x10e   : > { %v989_v39 = vadd.f32 %v986_v56, %v983_v45  ;;  %v1042_v17 = vadd.f32 %v1039_v14, %v1036_v60  ;;  %v1057_v57 = vsel %vm431_vm1, %v1909_v32, %v1050_v2  ;;  %v848_v1 = vsub.f32 %v842_v53, %v2276_v50 }
 0x10f   : > { %v1041_v12 = vadd.f32 %v1038_v28, %v1035_v30  ;;  %v1056_v9 = vsel %vm431_vm1, %v1913_v33, %v1048_v3 }
 0x110   : > { %v992_v62 = vmul.f32 0.11111111, %v989_v39  ;;  %v1087_v19 = vrot.slane %v1042_v17, 7  ;;  %v1111_v4 = vrot.slane %v1042_v17, 1 }
 0x111   : > { %v1062_v16 = vpop.permute.xlu1 %1061  ;;  %v1060_v48 = vpop.permute.xlu0 %1059  ;;  %v1086_v29 = vrot.slane %v1041_v12, 7  ;;  %v1110_v34 = vrot.slane %v1041_v12, 1 }
 0x112   : > { %v1069_v26 = vsel %vm444_vm0, %v1062_v16, %v1909_v32  ;;  %v1068_v8 = vsel %vm444_vm0, %v1060_v48, %v1913_v33  ;;  %v998_v31 = vsub.f32 %v992_v62, %v2265_v7  ;;  %v1093_v21 = vsel %vm508_vm4, %v1042_v17, %v1087_v19 }
 0x113   : > { %v1072_v15 = vsel %vm413_vm2, %v1069_v26, %v1057_v57  ;;  %v1075_v13 = vsel %vm414_vm3, %v1057_v57, %v1069_v26  ;;  %v1071_v7 = vsel %vm413_vm2, %v1068_v8, %v1056_v9  ;;  %v1074_v44 = vsel %vm414_vm3, %v1056_v9, %v1068_v8 }
 0x114   : > { %v1078_v43 = vadd.f32 %v1072_v15, %v1909_v32  ;;  %v1175_v6 = vadd.f32 %v998_v31, %v848_v1  ;;  %v1077_v24 = vadd.f32 %v1071_v7, %v1913_v33  ;;  %v1117_v49 = vsel %vm533_vm5, %v1111_v4, %v1042_v17 }
 0x115   : > { %v1025_v50 = vpop.permute.xlu1 %1024  ;;  %v1013_v40 = vpop.permute.xlu0 %1012  ;;  %v1092_v3 = vsel %vm508_vm4, %v1041_v12, %v1086_v29  ;;  %v1466_v29 = vld [vmem:[%s1695_s24] sm:$0xff] }
 0x116   : > { %v1081_v59 = vadd.f32 %v1078_v43, %v1075_v13  ;;  %v1031_v11 = vsel %vm444_vm0, %v1025_v50, %v1925_v35  ;;  %v1019_v55 = vsel %vm431_vm1, %v1925_v35, %v1013_v40  ;;  %v1178_v32 = vadd.f32 0.0009, %v1175_v6  ;;  %v1461_v50 = vpop.eup %1460 }
 0x117   : > { %v1034_v23 = vsel %vm413_vm2, %v1031_v11, %v1019_v55  ;;  %v1080_v5 = vadd.f32 %v1077_v24, %v1074_v44  ;;  %v1037_v39 = vsel %vm414_vm3, %v1019_v55, %v1031_v11  ;;  %v1155_v13 = vadd.f32 0.0001, %v2109_v0  ;;  %v1463_v0 = vpop.eup %1462  ;;  %v1467_v44 = vld [vmem:[%s1713_s13] sm:$0xff] }
 0x118   : > { %v1102_v25 = vrot.slane %v1081_v59, %v2010_v51  ;;  %v1126_v61 = vrot.slane %v1081_v59, %v2013_v52  ;;  %v1181_v33 = vmul.f32 %v1178_v32, %v1172_v18  ;;  %v1040_v58 = vadd.f32 %v1034_v23, %v1925_v35 }
 0x119   : > { %v1064_v46 = vpop.permute.xlu1 %1063  ;;  %v1052_v27 = vpop.permute.xlu0 %1051  ;;  %v1098_v56 = vrot.slane %v1080_v5, %v2010_v51  ;;  %v1122_v14 = vrot.slane %v1080_v5, %v2013_v52  ;;  %v402_v23 = vsub.f32 %v1466_v29, %v1467_v44 }
 0x11a   : > { %v1108_v47 = vsel %vm417_vm6, %v1102_v25, %v1093_v21  ;;  %v1070_v45 = vsel %vm444_vm0, %v1064_v46, %v1935_v37  ;;  %v1132_v35 = vsel %vm418_vm7, %v1126_v61, %v1117_v49  ;;  %v1058_v60 = vsel %vm431_vm1, %v1935_v37, %v1052_v27  ;;  %v1468_v25 = vld [vmem:[%s1695_s24 + $0x8] sm:$0xff]  ;;  %v1469_v61 = vld [vmem:[%s1713_s13 + $0x8] sm:$0xff] }
 0x11b   : > { %v1135_v2 = vadd.f32 %v1108_v47, %v1042_v17  ;;  %v1107_v53 = vsel %vm417_vm6, %v1098_v56, %v1092_v3  ;;  %v1116_v17 = vsel %vm533_vm5, %v1110_v34, %v1041_v12  ;;  %v1043_v16 = vadd.f32 %v1040_v58, %v1037_v39  ;;  %v1470_v47 = vld [vmem:[%s1695_s24 + $0x10] sm:$0xff]  ;;  %s1372_s24 = sshll.u32 %s1690_s28, 3 }
 0x11c   : > { %v1134_v62 = vadd.f32 %v1107_v53, %v1041_v12  ;;  %v1131_v48 = vsel %vm418_vm7, %v1122_v14, %v1116_v17  ;;  %v1073_v30 = vsel %vm413_vm2, %v1070_v45, %v1058_v60  ;;  %v1076_v12 = vsel %vm414_vm3, %v1058_v60, %v1070_v45 }
 0x11d   : > { %v1138_v28 = vadd.f32 %v1135_v2, %v1132_v35  ;;  %v1079_v8 = vadd.f32 %v1073_v30, %v1935_v37  ;;  %v1088_v15 = vrot.slane %v1043_v16, 7  ;;  %v1112_v9 = vrot.slane %v1043_v16, 1 }
 0x11e   : > { %v1137_v26 = vadd.f32 %v1134_v62, %v1131_v48  ;;  %1464 = vrcp.f32 %v1181_v33  ;;  %v403_v5 = vsub.f32 %v1468_v25, %v1469_v61  ;;  %v1471_v33 = vld [vmem:[%s1713_s13 + $0x10] sm:$0xff]  ;;  %v405_v14 = vand.u32 2147483647, %v402_v23  ;;  %s371_s13 = scalar_lea.vmem [#allocation4], %s1372_s24 }
 0x11f   : > { %v1141_v57 = vmul.f32 0.11111111, %v1138_v28  ;;  %v1082_v22 = vadd.f32 %v1079_v8, %v1076_v12  ;;  %v404_v56 = vsub.f32 %v1470_v47, %v1471_v33  ;;  %v1157_v3 = vadd.f32 0.0001, %v2338_v54  ;;  %s1223_s14 = sshll.u32 %s371_s13, 4  ;;  %s2490_s14 = int_to_ptr.vmem [resolvable:$true] %s1223_s14 }
 0x120   : > { %v1140_v31 = vmul.f32 0.11111111, %v1137_v26  ;;  %v406_v49 = vand.u32 2147483647, %v403_v5  ;;  %s1472_s18 = scalar_lea.vmem %s2490_s14, 128  ;;  %p1479_p6 = scmp.lt.s32.totalorder %s2490_s14, %s1477_s9 }
 0x121   : > { %v1147_v1 = vsub.f32 %v1141_v57, %v2125_v41  ;;  %v1106_v43 = vrot.slane %v1082_v22, %v2010_v51  ;;  %v1130_v6 = vrot.slane %v1082_v22, %v2013_v52  ;;  %v1094_v41 = vsel %vm508_vm4, %v1043_v16, %v1088_v15  ;;  %p1473_p3 = scmp.ne.s32.totalorder %s2490_s14, %s1472_s18  ;;  %p1480_p7 = scmp.lt.s32.totalorder %s1478_s10, %s1472_s18 }
 0x122   : > { %v1146_v19 = vsub.f32 %v1140_v31, %v2127_v10  ;;  %v1118_v10 = vsel %vm533_vm5, %v1112_v9, %v1043_v16  ;;  %v407_v60 = vand.u32 2147483647, %v404_v56  ;;  %v408_v28 = vadd.f32 %v406_v49, %v405_v14 }
 0x123   : > { %v1159_v18 = vmul.f32 2.0, %v1147_v1  ;;  %v1109_v36 = vsel %vm417_vm6, %v1106_v43, %v1094_v41  ;;  %v1133_v63 = vsel %vm418_vm7, %v1130_v6, %v1118_v10  ;;  %p1474_p4 = pnand %p1473_p3, %p1656_p8  ;;  %p1481_p10 = por %p1480_p7, %p1479_p6 }
 0x124   : > { %v1158_v37 = vmul.f32 2.0, %v1146_v19  ;;  %v1136_v51 = vadd.f32 %v1109_v36, %v1043_v16  ;;  %v409_v48 = vadd.f32 %v408_v28, %v407_v60 }
 0x125   : > { %v1162_v4 = vadd.f32 0.0009, %v1159_v18  ;;  %p1475_p5 = pneg %p1474_p4 }
 0x126   : > { %v1161_v7 = vadd.f32 0.0009, %v1158_v37  ;;  %v1139_v40 = vadd.f32 %v1136_v51, %v1133_v63  ;;  %v410_v26 = vmul.f32 0.33333334, %v409_v48 }
 0x127   : > { %v1165_v52 = vmul.f32 %v1162_v4, %v1156_v42  ;;  %p1482_p11 = pnand %p1481_p10, %p1475_p5 }
 0x128   : > { %v1164_v59 = vmul.f32 %v1161_v7, %v1155_v13  ;;  %v1142_v11 = vmul.f32 0.11111111, %v1139_v40  ;;  %v1465_v39 = vpop.eup %1464  ;;  %v1204_v31 = vmul.f32 0.15, %v410_v26 }
 0x129   : > { %v1186_v24 = vmul.f32 %v1461_v50, %v1165_v52 }
 0x12a   : > { %v1185_v55 = vmul.f32 %v1463_v0, %v1164_v59  ;;  %v1148_v34 = vsub.f32 %v1142_v11, %v2268_v20 }
 0x12b   : > { %v1189_v32 = vsub.f32 1.0, %v1186_v24 }
 0x12c   : > { %v1188_v38 = vsub.f32 1.0, %v1185_v55  ;;  %v1160_v58 = vmul.f32 2.0, %v1148_v34 }
 0x12d   : > { %v1192_v21 = vmul.f32 0.5, %v1189_v32 }
 0x12e   : > { %v1191_v46 = vmul.f32 0.5, %v1188_v38  ;;  %v1163_v2 = vadd.f32 0.0009, %v1160_v58 }
 0x12f   : > { %v1195_v27 = vmax.f32 %v1192_v21, 0.0 }
 0x130   : > { %v1194_v45 = vmax.f32 %v1191_v46, 0.0  ;;  %v1166_v53 = vmul.f32 %v1163_v2, %v1157_v3 }
 0x131   : > { %v1198_v35 = vmin.f32 %v1195_v27, 1.0 }
 0x132   : > { %v1197_v20 = vmin.f32 %v1194_v45, 1.0  ;;  %v1187_v17 = vmul.f32 %v1465_v39, %v1166_v53 }
 0x134   : > { %v1200_v62 = vadd.f32 %v1198_v35, %v1197_v20  ;;  %v1190_v16 = vsub.f32 1.0, %v1187_v17 }
 0x136   : > { %v1193_v30 = vmul.f32 0.5, %v1190_v16 }
 0x138   : > { %v1196_v57 = vmax.f32 %v1193_v30, 0.0 }
 0x13a   : > { %v1199_v8 = vmin.f32 %v1196_v57, 1.0 }
 0x13c   : > { %v1201_v54 = vadd.f32 %v1200_v62, %v1199_v8 }
 0x13e   : > { %v1202_v1 = vmul.f32 0.33333334, %v1201_v54 }
 0x140   : > { %v1203_v15 = vmul.f32 0.85, %v1202_v1 }
 0x142   : > { %v1205_v12 = vadd.f32 %v1204_v31, %v1203_v15 }
 0x144   : > { %1206 = vst [vmem:[%s371_s13] sm:$0xff] %v1205_v12 }
 0x145   : > { %1485 = shalt.err (!%p1482_p11)
}
 0x146   : > { %s1486_s28 = scalar_lea.hbm %s2488_s7, 128  ;;  %s1490_s6 = scalar_lea.hbm %s2546_s4, 512 }
 0x147   : > { %p1487_p12 = scmp.ne.s32.totalorder %s2488_s7, %s1486_s28  ;;  %p1491_p1 = scmp.lt.u32.totalorder %s2488_s7, %s2546_s4 }
 0x148   : > { %p1492_p2 = scmp.lt.u32.totalorder %s1490_s6, %s1486_s28  ;;  %p1494_p4 = scmp.lt.u32.totalorder %s1486_s28, %s2488_s7 }
 0x149   : > { %p1488_p13 = pnand %p1487_p12, %p1656_p8 }
 0x14a   : > { %p1493_p3 = por %p1492_p2, %p1491_p1 }
 0x14b   : > { %p1489_p0 = pneg %p1488_p13 }
 0x14c   : > { %p1495_p5 = por %p1494_p4, %p1493_p3 }
 0x14e   : > { %p1496_p6 = pnand %p1495_p5, %p1489_p0 }
 0x150   : > { %1499 = shalt.err (!%p1496_p6)
}
 0x151   : > { %1387 = dma.vmem_to_hbm [thread:$0]  (%p1656_p8), %s2490_s14, 128, %s2488_s7, %s1208_s19  }
 0x152 PF: > { %p1393_p7 = scmp.ge.s32.totalorder %s1566_s22, 2  ;;  %s1235_s11 = sand.u32 1, %s1538_s15  }
 0x153   : > { %s1236_s27 = scalar_lea.sflag [#allocation5], %s1235_s11 }
 0x154   : > { %p1390_p10 = pnand %p1393_p7, %p1660_p9 }
 0x156   : > { %1533 = dma.done.wait (!%p1390_p10), %s1236_s27, 128  }
 0x157   : > { %1535 = vsyncadd (!%p1390_p10), %s1236_s27, 4294967168  ;;  %s17_s22 = sadd.s32 1, %s1566_s22   ;;  %s2550_s15 = smov %s1542_s16 }
 0x158   : > { %p14_p11 = scmp.ge.s32.totalorder %s17_s22, 6   ;;  %s2551_s16 = smov %s1546_s17 }
 0x159   : > { %s2552_s17 = smov %s1668_s8  ;;  %s2553_s18 = smov %s1558_s20 }
 0x15a   : > { %s2554_s19 = smov %s1562_s21  ;;  %s2555_s20 = smov %s2558_s25 }
 0x15b   : > { %s2556_s21 = smov %s2562_s26  ;;  %16 = sbr.rel (!%p14_p11) target bundleno = 5 (0x5), region = 166 }
 0x162   :  { %1241 = vsyncpa [#allocation5], 1 }
 0x163   :  { %1243 = vsyncpa [#allocation5 + $0x1], 1 }

</bundles_post_ra>
